<compile_context>
chip_gen: v6e
topology: v6e:2x2x1
jax: 0.10.0
libtpu: 0.0.40
codegen_flags: <defaults>
</compile_context>

<pallas_src>
import math

import jax
import jax.numpy as jnp
from jax.experimental import pallas as pl
from jax.experimental.pallas import tpu as pltpu


def _round_up(x, m):
    return (x + m - 1) // m * m


def _make_head_kernel(pool_type, extra_pool, l2_normalize):
    """Fused ReLU + pool3d + (eval) dropout + (optional l2 norm) + Linear."""
    if pool_type not in ("max", "avg"):
        raise ValueError(pool_type)

    def kernel(x_ref, w_ref, b_ref, o_ref):
        # x_ref: [TB, C, H*W]  backbone features (f32)
        # w_ref: [C//extra_pool, Cpad]  classifier weight, pre-transposed/padded
        # b_ref: [1, Cpad]  bias (f32)
        # o_ref: [TB, Cpad] logits (f32, lane-dense)
        x = jnp.maximum(x_ref[...], 0.0)                      # ReLU (VPU)
        if pool_type == "max":
            pooled = jnp.max(x, axis=-1)                      # [TB, C] pool over H*W
        else:
            pooled = jnp.mean(x, axis=-1)
        if extra_pool > 1:                                    # pool3d channel window
            g = pooled[:, 0::extra_pool]
            for k in range(1, extra_pool):
                gk = pooled[:, k::extra_pool]
                g = jnp.maximum(g, gk) if pool_type == "max" else g + gk
            pooled = g if pool_type == "max" else g * (1.0 / extra_pool)
        # Dropout(p) in eval mode is the identity.
        if l2_normalize:                                      # l2_norm(features, axis=1)
            pooled = pooled * jax.lax.rsqrt(
                jnp.sum(pooled * pooled, axis=-1, keepdims=True))
        acc = jnp.dot(pooled.astype(w_ref.dtype), w_ref[...],
                      preferred_element_type=jnp.float32)     # MXU, f32 accumulate
        o_ref[...] = (acc + b_ref[...]).astype(o_ref.dtype)   # f32 bias add

    return kernel


def prepare_classifier_params(weight, bias=None, *, mxu_dtype=jnp.float32,
                              arcface=False):
    """One-time conversion of PyTorch nn.Linear / ArcMarginProduct params.

    weight: [num_classes, in_features] (PyTorch layout), bias: [num_classes].
    Returns (w_t_padded [in_features, Cpad], b_padded [1, Cpad]) where
    Cpad = round_up(num_classes, 128) so the kernel output is lane-dense.
    Hoisting the transpose / pad / dtype cast here removes a per-forward-call
    XLA transpose (static inference weights).
    """
    c_out, f_in = weight.shape
    c_pad = _round_up(c_out, 128)
    w = weight.astype(jnp.float32)
    if arcface:
        # ArcMarginProduct.forward = l2(features) @ l2(weight).T  (no bias);
        # call the forward with l2_normalize=True for the feature side.
        w = w / jnp.linalg.norm(w, axis=1, keepdims=True)
        b = jnp.zeros((c_out,), jnp.float32)
    else:
        assert bias is not None
        b = bias.astype(jnp.float32)
    w_t = jnp.pad(w.T, ((0, 0), (0, c_pad - c_out))).astype(mxu_dtype)
    b_pad = jnp.pad(b, (0, c_pad - c_out)).reshape(1, c_pad)
    return w_t, b_pad


def mydensenet_head_forward(feats, w_t_padded, b_padded, *, num_classes,
                            pool_type="max", extra_pool=1, l2_normalize=False):
    """Pallas implementation of the MyDenseNet head (post-backbone), eval mode.

    feats:      [B, C, H, W]  output of `self.features` (f32)
    w_t_padded: [C // extra_pool, Cpad]  from prepare_classifier_params
    b_padded:   [1, Cpad]
    """
    B, C, H, W = feats.shape
    assert C % extra_pool == 0
    f_in, c_pad = w_t_padded.shape
    assert f_in == C // extra_pool, (f_in, C, extra_pool)
    assert c_pad % 128 == 0 and b_padded.shape == (1, c_pad)

    HW = H * W
    x = feats.reshape(B, C, HW)                 # contiguous reshape (free)

    # Batch tile: multiple of 8 (f32 sublane), sized against an 8 MiB/buffer budget
    # so double-buffered input tiles stay well inside v7x's 64 MiB VMEM.
    per_row_bytes = C * HW * x.dtype.itemsize
    max_tb = max(8, ((8 << 20) // per_row_bytes) // 8 * 8)
    tb = max(8, min(_round_up(B, 8), max_tb, 512))
    b_pad_rows = _round_up(B, tb)
    if b_pad_rows != B:
        x = jnp.pad(x, ((0, b_pad_rows - B), (0, 0), (0, 0)))

    # Explicit VMEM budget: 2x double-buffered x tiles + resident weight/bias +
    # 2x output tiles + headroom.
    x_block = tb * per_row_bytes
    w_bytes = f_in * c_pad * w_t_padded.dtype.itemsize
    o_block = tb * c_pad * 4
    vmem_limit = 2 * x_block + w_bytes + c_pad * 4 + 2 * o_block + (4 << 20)
    vmem_limit = int(min(max(vmem_limit, 16 << 20), 48 << 20))

    kernel = _make_head_kernel(pool_type, extra_pool, l2_normalize)
    out = pl.pallas_call(
        kernel,
        out_shape=jax.ShapeDtypeStruct((b_pad_rows, c_pad), feats.dtype),
        grid=(b_pad_rows // tb,),
        in_specs=[
            pl.BlockSpec((tb, C, HW), lambda i: (i, 0, 0)),
            pl.BlockSpec((f_in, c_pad), lambda i: (0, 0)),
            pl.BlockSpec((1, c_pad), lambda i: (0, 0)),
        ],
        out_specs=pl.BlockSpec((tb, c_pad), lambda i: (i, 0)),
        compiler_params=pltpu.CompilerParams(
            dimension_semantics=("parallel",),   # v7x: 2 TCs split the batch grid
            vmem_limit_bytes=vmem_limit),
    )(x, w_t_padded, b_padded)
    return out[:B, :num_classes]


if __name__ == "__main__":
    # Small shapes consistent with the module's head (default config:
    # strategy='copy', pool_type='max', extra_pool=1, intermediate=0,
    # arcface=False, norm=False, dropout in eval mode).
    batch = 4
    feat_channels = 256      # backbone feature channels (densenet121 would be 1024)
    H = W = 8
    num_classes = 16
    extra_pool = 1

    key = jax.random.PRNGKey(0)
    k_x, k_w, k_b = jax.random.split(key, 3)

    feats = jax.random.normal(k_x, (batch, feat_channels, H, W), jnp.float32)

    in_features = feat_channels // extra_pool
    bound = 1.0 / math.sqrt(in_features)
    weight = jax.random.uniform(k_w, (num_classes, in_features), jnp.float32,
                                -bound, bound)
    bias = jax.random.uniform(k_b, (num_classes,), jnp.float32, -bound, bound)

    # Pure-JAX reference (high-precision matmul for a stable comparison).
    pooled_ref = jnp.max(jnp.maximum(feats, 0.0).reshape(batch, feat_channels, -1),
                         axis=-1)
    ref = jnp.dot(pooled_ref, weight.T,
                  precision=jax.lax.Precision.HIGHEST) + bias

    # ---- f32 MXU-input path ----
    w_t_f32, b_p = prepare_classifier_params(weight, bias, mxu_dtype=jnp.float32)
    out = mydensenet_head_forward(feats, w_t_f32, b_p, num_classes=num_classes,
                                  pool_type="max", extra_pool=extra_pool)
    out = jax.block_until_ready(out)
    assert out.shape == (batch, num_classes), out.shape
    err = float(jnp.max(jnp.abs(out - ref)))
    assert err < 5e-2, err

    # ---- bf16 MXU-input path (v5e/v6e bandwidth / MXU-rate optimization) ----
    w_t_bf16, b_p2 = prepare_classifier_params(weight, bias, mxu_dtype=jnp.bfloat16)
    out_bf16 = mydensenet_head_forward(feats, w_t_bf16, b_p2,
                                       num_classes=num_classes,
                                       pool_type="max", extra_pool=extra_pool)
    out_bf16 = jax.block_until_ready(out_bf16)
    err_bf16 = float(jnp.max(jnp.abs(out_bf16.astype(jnp.float32) - ref)))
    assert err_bf16 < 0.25, err_bf16

    print("KERNEL_OK")
</pallas_src>

<mosaic_0001>
module attributes {stable_mosaic.version = 11 : i64} {
  func.func @kernel(%arg0: i32, %arg1: memref<8x256x64xf32, #tpu.memory_space<vmem>>, %arg2: memref<256x128xf32, #tpu.memory_space<vmem>>, %arg3: memref<1x128xf32, #tpu.memory_space<vmem>>, %arg4: memref<8x128xf32, #tpu.memory_space<vmem>>) attributes {dimension_semantics = [#tpu.dimension_semantics<parallel>], iteration_bounds = array<i64: 1>, scalar_prefetch = 0 : i64, scratch_operands = 0 : i64, tpu.core_type = #tpu.core_type<tc>, window_params = [{transform_indices = @transform_0, window_bounds = array<i64: 8, 256, 64>}, {pipeline_mode = #tpu.pipeline_mode<synchronous>, transform_indices = @transform_1, window_bounds = array<i64: 256, 128>}, {pipeline_mode = #tpu.pipeline_mode<synchronous>, transform_indices = @transform_2, window_bounds = array<i64: 1, 128>}, {transform_indices = @transform_3, window_bounds = array<i64: 8, 128>}]} {
    %c0 = arith.constant 0 : index
    %c0_0 = arith.constant 0 : index
    %c0_1 = arith.constant 0 : index
    %0 = vector.load %arg1[%c0, %c0_0, %c0_1] : memref<8x256x64xf32, #tpu.memory_space<vmem>>, vector<8x256x64xf32>
    %cst = arith.constant 0.000000e+00 : f32
    %1 = vector.broadcast %cst : f32 to vector<8x256x64xf32>
    %2 = arith.maximumf %0, %1 : vector<8x256x64xf32>
    %cst_2 = arith.constant dense<0xFF800000> : vector<8x256xf32>
    %3 = vector.multi_reduction <maximumf>, %2, %cst_2 [2] : vector<8x256x64xf32> to vector<8x256xf32>
    %c0_3 = arith.constant 0 : index
    %c0_4 = arith.constant 0 : index
    %4 = vector.load %arg2[%c0_3, %c0_4] : memref<256x128xf32, #tpu.memory_space<vmem>>, vector<256x128xf32>
    %cst_5 = arith.constant dense<0.000000e+00> : vector<8x128xf32>
    %5 = tpu.matmul %3, %4, %cst_5 {dimension_numbers = #tpu.dot_dimension_numbers<[1], [0], [0], [1], [0, 0, 1, 1], [], []>} : vector<8x256xf32>, vector<256x128xf32>, vector<8x128xf32> -> vector<8x128xf32>
    %c0_6 = arith.constant 0 : index
    %c0_7 = arith.constant 0 : index
    %6 = vector.load %arg3[%c0_6, %c0_7] : memref<1x128xf32, #tpu.memory_space<vmem>>, vector<1x128xf32>
    %7 = vector.broadcast %6 : vector<1x128xf32> to vector<8x128xf32>
    %8 = arith.addf %5, %7 : vector<8x128xf32>
    %c0_8 = arith.constant 0 : index
    %c0_9 = arith.constant 0 : index
    %9 = vector.load %arg4[%c0_8, %c0_9] : memref<8x128xf32, #tpu.memory_space<vmem>>, vector<8x128xf32>
    tpu.vector_store %arg4[%c0_8, %c0_9], %8 {strides = array<i32>} : memref<8x128xf32, #tpu.memory_space<vmem>>, vector<8x128xf32>,
    return
  }
  func.func @transform_0(%arg0: i32) -> (i32, i32, i32) {
    %c0_i32 = arith.constant 0 : i32
    %c0_i32_0 = arith.constant 0 : i32
    %c0_i32_1 = arith.constant 0 : i32
    return %arg0, %c0_i32, %c0_i32_0 : i32, i32, i32
  }
  func.func @transform_1(%arg0: i32) -> (i32, i32) {
    %c0_i32 = arith.constant 0 : i32
    %c0_i32_0 = arith.constant 0 : i32
    %c0_i32_1 = arith.constant 0 : i32
    return %c0_i32, %c0_i32_0 : i32, i32
  }
  func.func @transform_2(%arg0: i32) -> (i32, i32) {
    %c0_i32 = arith.constant 0 : i32
    %c0_i32_0 = arith.constant 0 : i32
    %c0_i32_1 = arith.constant 0 : i32
    return %c0_i32, %c0_i32_0 : i32, i32
  }
  func.func @transform_3(%arg0: i32) -> (i32, i32) {
    %c0_i32 = arith.constant 0 : i32
    %c0_i32_0 = arith.constant 0 : i32
    return %arg0, %c0_i32 : i32, i32
  }
}

</mosaic_0001>

<bundles_post_ra>
// kernel: tpu_custom_call.1
= control target key start
LH: loop header
LB: loop body
LE: loop exit
PB: predicated region body
PF: predicated region fallthrough
CT: control target
= control target key end

     0   :  { %vm527_vm0 = vcmask 523264   ;;  %s4951_s0 = inlined_call_operand.vmem [shape: f32[8,256,64], index: 0, kind: input, shape index: {}]   ;;  %s4952_s1 = inlined_call_operand.vmem [shape: f32[256,128], index: 1, kind: input, shape index: {}]   ;;  %s4953_s2 = inlined_call_operand.vmem [shape: f32[1,128], index: 2, kind: input, shape index: {}]   ;;  %s4954_s3 = inlined_call_operand.hbm [shape: f32[8,128], index: 3, kind: output, shape index: {}]  }
   0x1   :  { %v17_v0 = vld [vmem:[%s4951_s0 + $0x10] sm:$0xff]  ;;  %v15_v1 = vld [vmem:[%s4951_s0] sm:$0xff]  ;;  %v18_v2 = vld [vmem:[%s4951_s0 + $0x18] sm:$0xff] }
   0x2   :  { %v273_v3 = vmax.f32 %v17_v0, 0.0  ;;  %v271_v4 = vmax.f32 %v15_v1, 0.0  ;;  %v274_v5 = vmax.f32 %v18_v2, 0.0  ;;  %v16_v6 = vld [vmem:[%s4951_s0 + $0x8] sm:$0xff]  ;;  %v19_v9 = vld [vmem:[%s4951_s0 + $0x20] sm:$0xff]  ;;  %v22_v16 = vld [vmem:[%s4951_s0 + $0x38] sm:$0xff] }
   0x3   :  { %v272_v7 = vmax.f32 %v16_v6, 0.0  ;;  %v20_v8 = vld [vmem:[%s4951_s0 + $0x28] sm:$0xff]  ;;  %v275_v15 = vmax.f32 %v19_v9, 0.0  ;;  %v21_v17 = vld [vmem:[%s4951_s0 + $0x30] sm:$0xff]  ;;  %v278_v20 = vmax.f32 %v22_v16, 0.0  ;;  %v23_v23 = vld [vmem:[%s4951_s0 + $0x40] sm:$0xff] }
   0x4   :  { %v534_v10 = vsel %vm527_vm0, %v273_v3, -inf  ;;  %v528_v11 = vsel %vm527_vm0, %v271_v4, -inf  ;;  %v537_v12 = vsel %vm527_vm0, %v274_v5, -inf  ;;  %v276_v14 = vmax.f32 %v20_v8, 0.0  ;;  %v24_v22 = vld [vmem:[%s4951_s0 + $0x48] sm:$0xff]  ;;  %v26_v28 = vld [vmem:[%s4951_s0 + $0x58] sm:$0xff] }
   0x5   :  { %535 = vmax.xlane.f32.xlu1 %v534_v10  ;;  %529 = vmax.xlane.f32.xlu0 %v528_v11  ;;  %v531_v13 = vsel %vm527_vm0, %v272_v7, -inf  ;;  %v540_v19 = vsel %vm527_vm0, %v275_v15, -inf  ;;  %v277_v21 = vmax.f32 %v21_v17, 0.0  ;;  %v549_v24 = vsel %vm527_vm0, %v278_v20, -inf  ;;  %v25_v29 = vld [vmem:[%s4951_s0 + $0x50] sm:$0xff]  ;;  %v28_v34 = vld [vmem:[%s4951_s0 + $0x68] sm:$0xff] }
   0x6   :  { %v543_v18 = vsel %vm527_vm0, %v276_v14, -inf  ;;  %v280_v26 = vmax.f32 %v24_v22, 0.0  ;;  %v279_v27 = vmax.f32 %v23_v23, 0.0  ;;  %v282_v32 = vmax.f32 %v26_v28, 0.0  ;;  %v27_v35 = vld [vmem:[%s4951_s0 + $0x60] sm:$0xff]  ;;  %v30_v40 = vld [vmem:[%s4951_s0 + $0x78] sm:$0xff] }
   0x7   :  { %v546_v25 = vsel %vm527_vm0, %v277_v21, -inf  ;;  %v281_v33 = vmax.f32 %v25_v29, 0.0  ;;  %v284_v38 = vmax.f32 %v28_v34, 0.0  ;;  %v283_v39 = vmax.f32 %v27_v35, 0.0  ;;  %v29_v41 = vld [vmem:[%s4951_s0 + $0x70] sm:$0xff]  ;;  %v32_v46 = vld [vmem:[%s4951_s0 + $0x88] sm:$0xff] }
   0x8   :  { %v555_v30 = vsel %vm527_vm0, %v280_v26, -inf  ;;  %v552_v31 = vsel %vm527_vm0, %v279_v27, -inf  ;;  %v561_v36 = vsel %vm527_vm0, %v282_v32, -inf  ;;  %v286_v44 = vmax.f32 %v30_v40, 0.0  ;;  %v31_v47 = vld [vmem:[%s4951_s0 + $0x80] sm:$0xff]  ;;  %v34_v52 = vld [vmem:[%s4951_s0 + $0x98] sm:$0xff] }
   0x9   :  { %538 = vmax.xlane.f32.xlu1 %v537_v12  ;;  %532 = vmax.xlane.f32.xlu0 %v531_v13  ;;  %v558_v37 = vsel %vm527_vm0, %v281_v33, -inf  ;;  %v567_v42 = vsel %vm527_vm0, %v284_v38, -inf  ;;  %v564_v43 = vsel %vm527_vm0, %v283_v39, -inf  ;;  %v285_v45 = vmax.f32 %v29_v41, 0.0  ;;  %v33_v53 = vld [vmem:[%s4951_s0 + $0x90] sm:$0xff]  ;;  %v36_v58 = vld [vmem:[%s4951_s0 + $0xa8] sm:$0xff] }
   0xa   :  { %v573_v48 = vsel %vm527_vm0, %v286_v44, -inf  ;;  %v288_v50 = vmax.f32 %v32_v46, 0.0  ;;  %v287_v51 = vmax.f32 %v31_v47, 0.0  ;;  %v290_v56 = vmax.f32 %v34_v52, 0.0  ;;  %v35_v59 = vld [vmem:[%s4951_s0 + $0xa0] sm:$0xff]  ;;  %v38_v0 = vld [vmem:[%s4951_s0 + $0xb8] sm:$0xff] }
   0xb   :  { %v570_v49 = vsel %vm527_vm0, %v285_v45, -inf  ;;  %v289_v57 = vmax.f32 %v33_v53, 0.0  ;;  %v292_v62 = vmax.f32 %v36_v58, 0.0  ;;  %v291_v63 = vmax.f32 %v35_v59, 0.0  ;;  %v37_v1 = vld [vmem:[%s4951_s0 + $0xb0] sm:$0xff] }
   0xc   :  { %v579_v54 = vsel %vm527_vm0, %v288_v50, -inf  ;;  %v576_v55 = vsel %vm527_vm0, %v287_v51, -inf  ;;  %v585_v60 = vsel %vm527_vm0, %v290_v56, -inf  ;;  %v294_v4 = vmax.f32 %v38_v0, 0.0 }
   0xd   :  { %544 = vmax.xlane.f32.xlu1 %v543_v18  ;;  %541 = vmax.xlane.f32.xlu0 %v540_v19  ;;  %v582_v61 = vsel %vm527_vm0, %v289_v57, -inf  ;;  %v591_v2 = vsel %vm527_vm0, %v292_v62, -inf  ;;  %v588_v3 = vsel %vm527_vm0, %v291_v63, -inf  ;;  %v293_v5 = vmax.f32 %v37_v1, 0.0 }
  0x11   :  { %550 = vmax.xlane.f32.xlu1 %v549_v24  ;;  %547 = vmax.xlane.f32.xlu0 %v546_v25 }
  0x15   :  { %556 = vmax.xlane.f32.xlu1 %v555_v30  ;;  %553 = vmax.xlane.f32.xlu0 %v552_v31 }
  0x19   :  { %562 = vmax.xlane.f32.xlu1 %v561_v36  ;;  %559 = vmax.xlane.f32.xlu0 %v558_v37 }
  0x1d   :  { %568 = vmax.xlane.f32.xlu1 %v567_v42  ;;  %565 = vmax.xlane.f32.xlu0 %v564_v43 }
  0x21   :  { %574 = vmax.xlane.f32.xlu1 %v573_v48  ;;  %571 = vmax.xlane.f32.xlu0 %v570_v49 }
  0x25   :  { %580 = vmax.xlane.f32.xlu1 %v579_v54  ;;  %577 = vmax.xlane.f32.xlu0 %v576_v55 }
  0x29   :  { %586 = vmax.xlane.f32.xlu1 %v585_v60  ;;  %583 = vmax.xlane.f32.xlu0 %v582_v61 }
  0x2a   :  { %8 = vsyncpa [#allocation3], 0  ;;  %v40_v6 = vld [vmem:[%s4951_s0 + $0xc8] sm:$0xff]  ;;  %v39_v7 = vld [vmem:[%s4951_s0 + $0xc0] sm:$0xff]  ;;  %v597_v8 = vsel %vm527_vm0, %v294_v4, -inf  ;;  %v594_v9 = vsel %vm527_vm0, %v293_v5, -inf }
  0x2b   :  { %v296_v10 = vmax.f32 %v40_v6, 0.0  ;;  %v295_v11 = vmax.f32 %v39_v7, 0.0  ;;  %v42_v12 = vld [vmem:[%s4951_s0 + $0xd8] sm:$0xff]  ;;  %v41_v13 = vld [vmem:[%s4951_s0 + $0xd0] sm:$0xff]  ;;  %v44_v18 = vld [vmem:[%s4951_s0 + $0xe8] sm:$0xff]  ;;  %vm1602_vm1 = vcmask 130112  }
  0x2c   :  { %v298_v16 = vmax.f32 %v42_v12, 0.0  ;;  %v297_v17 = vmax.f32 %v41_v13, 0.0  ;;  %v43_v19 = vld [vmem:[%s4951_s0 + $0xe0] sm:$0xff]  ;;  %v300_v22 = vmax.f32 %v44_v18, 0.0  ;;  %v46_v24 = vld [vmem:[%s4951_s0 + $0xf8] sm:$0xff]  ;;  %v45_v25 = vld [vmem:[%s4951_s0 + $0xf0] sm:$0xff] }
  0x2d   :  { %592 = vmax.xlane.f32.xlu1 %v591_v2  ;;  %589 = vmax.xlane.f32.xlu0 %v588_v3  ;;  %v603_v14 = vsel %vm527_vm0, %v296_v10, -inf  ;;  %v600_v15 = vsel %vm527_vm0, %v295_v11, -inf  ;;  %v299_v23 = vmax.f32 %v43_v19, 0.0  ;;  %v302_v28 = vmax.f32 %v46_v24, 0.0  ;;  %v48_v30 = vld [vmem:[%s4951_s0 + $0x108] sm:$0xff]  ;;  %v47_v31 = vld [vmem:[%s4951_s0 + $0x100] sm:$0xff] }
  0x2e   :  { %v609_v20 = vsel %vm527_vm0, %v298_v16, -inf  ;;  %v606_v21 = vsel %vm527_vm0, %v297_v17, -inf  ;;  %v615_v26 = vsel %vm527_vm0, %v300_v22, -inf  ;;  %v301_v29 = vmax.f32 %v45_v25, 0.0  ;;  %v50_v36 = vld [vmem:[%s4951_s0 + $0x118] sm:$0xff]  ;;  %v49_v37 = vld [vmem:[%s4951_s0 + $0x110] sm:$0xff] }
  0x2f   :  { %v612_v27 = vsel %vm527_vm0, %v299_v23, -inf  ;;  %v621_v32 = vsel %vm527_vm0, %v302_v28, -inf  ;;  %v304_v34 = vmax.f32 %v48_v30, 0.0  ;;  %v303_v35 = vmax.f32 %v47_v31, 0.0  ;;  %v52_v42 = vld [vmem:[%s4951_s0 + $0x128] sm:$0xff]  ;;  %v51_v43 = vld [vmem:[%s4951_s0 + $0x120] sm:$0xff] }
  0x30   :  { %v618_v33 = vsel %vm527_vm0, %v301_v29, -inf  ;;  %v306_v40 = vmax.f32 %v50_v36, 0.0  ;;  %v305_v41 = vmax.f32 %v49_v37, 0.0  ;;  %v308_v46 = vmax.f32 %v52_v42, 0.0  ;;  %v54_v48 = vld [vmem:[%s4951_s0 + $0x138] sm:$0xff]  ;;  %v53_v49 = vld [vmem:[%s4951_s0 + $0x130] sm:$0xff] }
  0x31   :  { %598 = vmax.xlane.f32.xlu1 %v597_v8  ;;  %595 = vmax.xlane.f32.xlu0 %v594_v9  ;;  %v627_v38 = vsel %vm527_vm0, %v304_v34, -inf  ;;  %v624_v39 = vsel %vm527_vm0, %v303_v35, -inf  ;;  %v307_v47 = vmax.f32 %v51_v43, 0.0  ;;  %v310_v52 = vmax.f32 %v54_v48, 0.0  ;;  %v56_v54 = vld [vmem:[%s4951_s0 + $0x148] sm:$0xff]  ;;  %v55_v55 = vld [vmem:[%s4951_s0 + $0x140] sm:$0xff] }
  0x32   :  { %v633_v44 = vsel %vm527_vm0, %v306_v40, -inf  ;;  %v630_v45 = vsel %vm527_vm0, %v305_v41, -inf  ;;  %v639_v50 = vsel %vm527_vm0, %v308_v46, -inf  ;;  %v309_v53 = vmax.f32 %v53_v49, 0.0  ;;  %v58_v60 = vld [vmem:[%s4951_s0 + $0x158] sm:$0xff]  ;;  %v57_v61 = vld [vmem:[%s4951_s0 + $0x150] sm:$0xff] }
  0x33   :  { %v636_v51 = vsel %vm527_vm0, %v307_v47, -inf  ;;  %v645_v56 = vsel %vm527_vm0, %v310_v52, -inf  ;;  %v312_v58 = vmax.f32 %v56_v54, 0.0  ;;  %v311_v59 = vmax.f32 %v55_v55, 0.0  ;;  %v60_v2 = vld [vmem:[%s4951_s0 + $0x168] sm:$0xff]  ;;  %v59_v3 = vld [vmem:[%s4951_s0 + $0x160] sm:$0xff] }
  0x34   :  { %v642_v57 = vsel %vm527_vm0, %v309_v53, -inf  ;;  %v314_v0 = vmax.f32 %v58_v60, 0.0  ;;  %v313_v1 = vmax.f32 %v57_v61, 0.0  ;;  %v316_v6 = vmax.f32 %v60_v2, 0.0  ;;  %v62_v8 = vld [vmem:[%s4951_s0 + $0x178] sm:$0xff]  ;;  %v61_v9 = vld [vmem:[%s4951_s0 + $0x170] sm:$0xff] }
  0x35   :  { %604 = vmax.xlane.f32.xlu1 %v603_v14  ;;  %601 = vmax.xlane.f32.xlu0 %v600_v15  ;;  %v651_v62 = vsel %vm527_vm0, %v312_v58, -inf  ;;  %v648_v63 = vsel %vm527_vm0, %v311_v59, -inf  ;;  %v315_v7 = vmax.f32 %v59_v3, 0.0  ;;  %v318_v12 = vmax.f32 %v62_v8, 0.0  ;;  %v64_v14 = vld [vmem:[%s4951_s0 + $0x188] sm:$0xff]  ;;  %v63_v15 = vld [vmem:[%s4951_s0 + $0x180] sm:$0xff] }
  0x36   :  { %v657_v4 = vsel %vm527_vm0, %v314_v0, -inf  ;;  %v654_v5 = vsel %vm527_vm0, %v313_v1, -inf  ;;  %v663_v10 = vsel %vm527_vm0, %v316_v6, -inf  ;;  %v317_v13 = vmax.f32 %v61_v9, 0.0  ;;  %s3054_s20 = smov [#allocation2]  }
  0x37   :  { %v660_v11 = vsel %vm527_vm0, %v315_v7, -inf  ;;  %v669_v16 = vsel %vm527_vm0, %v318_v12, -inf  ;;  %v320_v18 = vmax.f32 %v64_v14, 0.0  ;;  %v319_v19 = vmax.f32 %v63_v15, 0.0  ;;  %s2987_s21 = sshll.u32 %s3054_s20, 4  ;;  %s2988_s21 = int_to_ptr.vmem [resolvable:$true] %s2987_s21 }
  0x38   :  { %v666_v17 = vsel %vm527_vm0, %v317_v13, -inf  ;;  %v1591_v12 = vlaneseq  ;;  %vm1609_vm2 = vcmask 195712   ;;  %vm1616_vm3 = vcmask 261312   ;;  %s3032_s22 = scalar_lea.vmem %s2988_s21, 128  ;;  %p3037_p1 = scmp.lt.s32.totalorder %s2988_s21, %s2988_s21 }
  0x39   :  { %610 = vmax.xlane.f32.xlu1 %v609_v20  ;;  %607 = vmax.xlane.f32.xlu0 %v606_v21  ;;  %v66_v20 = vld [vmem:[%s4951_s0 + $0x198] sm:$0xff]  ;;  %v65_v21 = vld [vmem:[%s4951_s0 + $0x190] sm:$0xff]  ;;  %v675_v22 = vsel %vm527_vm0, %v320_v18, -inf  ;;  %v672_v23 = vsel %vm527_vm0, %v319_v19, -inf  ;;  %vm1623_vm4 = vcmask 326912   ;;  %vm1630_vm5 = vcmask 392512   ;;  %p3033_p0 = scmp.ne.s32.totalorder %s2988_s21, %s3032_s22  ;;  %p3038_p2 = scmp.lt.s32.totalorder %s3032_s22, %s3032_s22 }
  0x3a   :  { %v322_v24 = vmax.f32 %v66_v20, 0.0  ;;  %v321_v25 = vmax.f32 %v65_v21, 0.0  ;;  %v85_v18 = vld [vmem:[%s4951_s0 + $0x230] sm:$0xff]  ;;  %v3359_v19 = vand.u32 127, %v1591_v12  ;;  %vm1637_vm6 = vcmask 458112  }
  0x3b   :  { %vm1644_vm7 = vcmask 523712   ;;  %vm1651_vm8 = vcmask 589312   ;;  %vm1658_vm9 = vcmask 654912   ;;  %vm4956_vm10 = vcmask 720512   ;;  %p3039_p3 = por %p3038_p2, %p3037_p1 }
  0x3c   :  { %v681_v28 = vsel %vm527_vm0, %v322_v24, -inf  ;;  %v678_v29 = vsel %vm527_vm0, %v321_v25, -inf  ;;  %v88_v24 = vld [vmem:[%s4951_s0 + $0x248] sm:$0xff]  ;;  %v87_v25 = vld [vmem:[%s4951_s0 + $0x240] sm:$0xff]  ;;  %vm1672_vm11 = vcmask 786112   ;;  %vm4955_vm12 = vcmask 851712  }
  0x3d   :  { %616 = vmax.xlane.f32.xlu1 %v615_v26  ;;  %613 = vmax.xlane.f32.xlu0 %v612_v27  ;;  %v68_v26 = vld [vmem:[%s4951_s0 + $0x1a8] sm:$0xff]  ;;  %v67_v27 = vld [vmem:[%s4951_s0 + $0x1a0] sm:$0xff]  ;;  %vm1686_vm13 = vcmask 917312   ;;  %vm1693_vm14 = vcmask 982912   ;;  %vm1700_vm15 = vcmask 1048512   ;;  %p3040_p4 = pnand %p3039_p3, %p3033_p0 }
  0x3e   :  { %v324_v30 = vmax.f32 %v68_v26, 0.0  ;;  %v323_v31 = vmax.f32 %v67_v27, 0.0  ;;  %v3369_v26 = vshrl.u32 %v1591_v12, 7  ;;  %v1611_v27 = vadd.s32 4294967272, %v3359_v19  ;;  %v93_v12 = vld [vmem:[%s4951_s0 + $0x270] sm:$0xff] }
  0x40   :  { %v687_v34 = vsel %vm527_vm0, %v324_v30, -inf  ;;  %v684_v35 = vsel %vm527_vm0, %v323_v31, -inf  ;;  %v344_v30 = vmax.f32 %v88_v24, 0.0  ;;  %v343_v31 = vmax.f32 %v87_v25, 0.0  ;;  %v95_v25 = vld [vmem:[%s4951_s0 + $0x280] sm:$0xff] }
  0x41   :  { %622 = vmax.xlane.f32.xlu1 %v621_v32  ;;  %619 = vmax.xlane.f32.xlu0 %v618_v33  ;;  %v70_v32 = vld [vmem:[%s4951_s0 + $0x1b8] sm:$0xff]  ;;  %v69_v33 = vld [vmem:[%s4951_s0 + $0x1b0] sm:$0xff]  ;;  %v349_v24 = vmax.f32 %v93_v12, 0.0 }
  0x42   :  { %v326_v36 = vmax.f32 %v70_v32, 0.0  ;;  %v325_v37 = vmax.f32 %v69_v33, 0.0 }
  0x44   :  { %v693_v40 = vsel %vm527_vm0, %v326_v36, -inf  ;;  %v690_v41 = vsel %vm527_vm0, %v325_v37, -inf  ;;  %v1625_v36 = vadd.s32 4294967256, %v3359_v19  ;;  %v1618_v37 = vadd.s32 4294967264, %v3359_v19 }
  0x45   :  { %628 = vmax.xlane.f32.xlu1 %v627_v38  ;;  %625 = vmax.xlane.f32.xlu0 %v624_v39  ;;  %v72_v38 = vld [vmem:[%s4951_s0 + $0x1c8] sm:$0xff]  ;;  %v71_v39 = vld [vmem:[%s4951_s0 + $0x1c0] sm:$0xff] }
  0x46   :  { %v328_v42 = vmax.f32 %v72_v38, 0.0  ;;  %v327_v43 = vmax.f32 %v71_v39, 0.0  ;;  %v90_v38 = vld [vmem:[%s4951_s0 + $0x258] sm:$0xff]  ;;  %v89_v39 = vld [vmem:[%s4951_s0 + $0x250] sm:$0xff] }
  0x48   :  { %v699_v46 = vsel %vm527_vm0, %v328_v42, -inf  ;;  %v696_v47 = vsel %vm527_vm0, %v327_v43, -inf }
  0x49   :  { %634 = vmax.xlane.f32.xlu1 %v633_v44  ;;  %631 = vmax.xlane.f32.xlu0 %v630_v45  ;;  %v74_v44 = vld [vmem:[%s4951_s0 + $0x1d8] sm:$0xff]  ;;  %v73_v45 = vld [vmem:[%s4951_s0 + $0x1d0] sm:$0xff] }
  0x4a   :  { %v330_v48 = vmax.f32 %v74_v44, 0.0  ;;  %v329_v49 = vmax.f32 %v73_v45, 0.0  ;;  %v747_v44 = vsel %vm527_vm0, %v344_v30, -inf  ;;  %v744_v45 = vsel %vm527_vm0, %v343_v31, -inf }
  0x4b   :  { %v1660_v30 = vadd.s32 4294967216, %v3359_v19 }
  0x4c   :  { %v705_v52 = vsel %vm527_vm0, %v330_v48, -inf  ;;  %v702_v53 = vsel %vm527_vm0, %v329_v49, -inf  ;;  %v92_v48 = vld [vmem:[%s4951_s0 + $0x268] sm:$0xff] }
  0x4d   :  { %640 = vmax.xlane.f32.xlu1 %v639_v50  ;;  %637 = vmax.xlane.f32.xlu0 %v636_v51  ;;  %v76_v50 = vld [vmem:[%s4951_s0 + $0x1e8] sm:$0xff]  ;;  %v75_v51 = vld [vmem:[%s4951_s0 + $0x1e0] sm:$0xff] }
  0x4e   :  { %v332_v54 = vmax.f32 %v76_v50, 0.0  ;;  %v331_v55 = vmax.f32 %v75_v51, 0.0  ;;  %v3403_v51 = vsub.s32 %v1625_v36, %v3369_v26 }
  0x50   :  { %v711_v58 = vsel %vm527_vm0, %v332_v54, -inf  ;;  %v708_v59 = vsel %vm527_vm0, %v331_v55, -inf  ;;  %v91_v54 = vld [vmem:[%s4951_s0 + $0x260] sm:$0xff] }
  0x51   :  { %646 = vmax.xlane.f32.xlu1 %v645_v56  ;;  %643 = vmax.xlane.f32.xlu0 %v642_v57  ;;  %v78_v56 = vld [vmem:[%s4951_s0 + $0x1f8] sm:$0xff]  ;;  %v77_v57 = vld [vmem:[%s4951_s0 + $0x1f0] sm:$0xff] }
  0x52   :  { %v334_v60 = vmax.f32 %v78_v56, 0.0  ;;  %v333_v61 = vmax.f32 %v77_v57, 0.0 }
  0x54   :  { %v717_v0 = vsel %vm527_vm0, %v334_v60, -inf  ;;  %v714_v1 = vsel %vm527_vm0, %v333_v61, -inf  ;;  %v348_v60 = vmax.f32 %v92_v48, 0.0 }
  0x55   :  { %652 = vmax.xlane.f32.xlu1 %v651_v62  ;;  %649 = vmax.xlane.f32.xlu0 %v648_v63  ;;  %v80_v62 = vld [vmem:[%s4951_s0 + $0x208] sm:$0xff]  ;;  %v79_v63 = vld [vmem:[%s4951_s0 + $0x200] sm:$0xff] }
  0x56   :  { %v336_v2 = vmax.f32 %v80_v62, 0.0  ;;  %v335_v3 = vmax.f32 %v79_v63, 0.0 }
  0x58   :  { %v723_v6 = vsel %vm527_vm0, %v336_v2, -inf  ;;  %v720_v7 = vsel %vm527_vm0, %v335_v3, -inf }
  0x59   :  { %658 = vmax.xlane.f32.xlu1 %v657_v4  ;;  %655 = vmax.xlane.f32.xlu0 %v654_v5  ;;  %v82_v4 = vld [vmem:[%s4951_s0 + $0x218] sm:$0xff]  ;;  %v81_v5 = vld [vmem:[%s4951_s0 + $0x210] sm:$0xff] }
  0x5a   :  { %v338_v8 = vmax.f32 %v82_v4, 0.0  ;;  %v337_v9 = vmax.f32 %v81_v5, 0.0  ;;  %v1653_v5 = vadd.s32 4294967224, %v3359_v19 }
  0x5c   :  { %v729_v13 = vsel %vm527_vm0, %v338_v8, -inf  ;;  %v726_v14 = vsel %vm527_vm0, %v337_v9, -inf }
  0x5d   :  { %664 = vmax.xlane.f32.xlu1 %v663_v10  ;;  %661 = vmax.xlane.f32.xlu0 %v660_v11  ;;  %v84_v10 = vld [vmem:[%s4951_s0 + $0x228] sm:$0xff]  ;;  %v83_v11 = vld [vmem:[%s4951_s0 + $0x220] sm:$0xff] }
  0x5e   :  { %v340_v15 = vmax.f32 %v84_v10, 0.0 }
  0x60   :  { %v735_v20 = vsel %vm527_vm0, %v340_v15, -inf }
  0x61   :  { %670 = vmax.xlane.f32.xlu1 %v669_v16  ;;  %667 = vmax.xlane.f32.xlu0 %v666_v17  ;;  %v339_v16 = vmax.f32 %v83_v11, 0.0  ;;  %v86_v17 = vld [vmem:[%s4951_s0 + $0x238] sm:$0xff] }
  0x63   :  { %v732_v21 = vsel %vm527_vm0, %v339_v16, -inf }
  0x65   :  { %676 = vmax.xlane.f32.xlu1 %v675_v22  ;;  %673 = vmax.xlane.f32.xlu0 %v672_v23  ;;  %v342_v22 = vmax.f32 %v86_v17, 0.0  ;;  %v341_v23 = vmax.f32 %v85_v18, 0.0  ;;  %v96_v17 = vld [vmem:[%s4951_s0 + $0x288] sm:$0xff] }
  0x66   :  { %v352_v31 = vmax.f32 %v96_v17, 0.0 }
  0x69   :  { %682 = vmax.xlane.f32.xlu1 %v681_v28  ;;  %679 = vmax.xlane.f32.xlu0 %v678_v29  ;;  %v1597_v28 = vadd.s32 4294967288, %v3359_v19  ;;  %v1604_v29 = vadd.s32 4294967280, %v3359_v19 }
  0x6b   :  { %v3392_v42 = vsub.s32 %v1597_v28, %v3369_v26  ;;  %v3395_v43 = vsub.s32 %v1604_v29, %v3369_v26  ;;  %v1667_v29 = vadd.s32 4294967208, %v3359_v19 }
  0x6d   :  { %688 = vmax.xlane.f32.xlu1 %v687_v34  ;;  %685 = vmax.xlane.f32.xlu0 %v684_v35  ;;  %v741_v34 = vsel %vm527_vm0, %v342_v22, -inf  ;;  %v738_v35 = vsel %vm527_vm0, %v341_v23, -inf  ;;  %v3446_v22 = vsub.s32 %v1653_v5, %v3369_v26  ;;  %v3470_v48 = vsub.s32 %v1667_v29, %v3369_v26  ;;  %v99_v5 = vld [vmem:[%s4951_s0 + $0x2a0] sm:$0xff] }
  0x71   :  { %694 = vmax.xlane.f32.xlu1 %v693_v40  ;;  %691 = vmax.xlane.f32.xlu0 %v690_v41  ;;  %v3386_v40 = vsub.s32 %v3359_v19, %v3369_v26  ;;  %v3389_v41 = vsub.s32 %v1611_v27, %v3369_v26 }
  0x75   :  { %700 = vmax.xlane.f32.xlu1 %v699_v46  ;;  %697 = vmax.xlane.f32.xlu0 %v696_v47  ;;  %v346_v46 = vmax.f32 %v90_v38, 0.0  ;;  %v345_v47 = vmax.f32 %v89_v39, 0.0  ;;  %v762_v38 = vsel %vm527_vm0, %v349_v24, -inf  ;;  %v1681_v39 = vadd.s32 4294967192, %v3359_v19 }
  0x77   :  { %v753_v62 = vsel %vm527_vm0, %v346_v46, -inf  ;;  %v750_v63 = vsel %vm527_vm0, %v345_v47, -inf }
  0x79   :  { %706 = vmax.xlane.f32.xlu1 %v705_v52  ;;  %703 = vmax.xlane.f32.xlu0 %v702_v53  ;;  %v3406_v52 = vsub.s32 %v1618_v37, %v3369_v26  ;;  %v1639_v53 = vadd.s32 4294967240, %v3359_v19 }
  0x7b   :  { %v3422_v4 = vsub.s32 %v1639_v53, %v3369_v26  ;;  %v771_v53 = vsel %vm527_vm0, %v352_v31, -inf  ;;  %v104_v31 = vld [vmem:[%s4951_s0 + $0x2c8] sm:$0xff] }
  0x7d   :  { %712 = vmax.xlane.f32.xlu1 %v711_v58  ;;  %709 = vmax.xlane.f32.xlu0 %v708_v59  ;;  %v1632_v58 = vadd.s32 4294967248, %v3359_v19 }
  0x7f   :  { %v3433_v11 = vsub.s32 %v1632_v58, %v3369_v26 }
  0x81   :  { %718 = vmax.xlane.f32.xlu1 %v717_v0  ;;  %715 = vmax.xlane.f32.xlu0 %v714_v1  ;;  %v347_v0 = vmax.f32 %v91_v54, 0.0 }
  0x83   :  { %v756_v15 = vsel %vm527_vm0, %v347_v0, -inf }
  0x85   :  { %724 = vmax.xlane.f32.xlu1 %v723_v6  ;;  %721 = vmax.xlane.f32.xlu0 %v720_v7  ;;  %v1646_v6 = vadd.s32 4294967232, %v3359_v19  ;;  %v94_v7 = vld [vmem:[%s4951_s0 + $0x278] sm:$0xff] }
  0x86   :  { %v350_v16 = vmax.f32 %v94_v7, 0.0 }
  0x87   :  { %v3449_v23 = vsub.s32 %v1646_v6, %v3369_v26 }
  0x89   :  { %730 = vmax.xlane.f32.xlu1 %v729_v13  ;;  %727 = vmax.xlane.f32.xlu0 %v726_v14  ;;  %v759_v13 = vsel %vm527_vm0, %v348_v60, -inf  ;;  %v3483_v60 = vsub.s32 %v1681_v39, %v3369_v26 }
  0x8d   :  { %736 = vmax.xlane.f32.xlu1 %v735_v20  ;;  %733 = vmax.xlane.f32.xlu0 %v732_v21 }
  0x8e   :  { %v536_v32 = vpop.xlane.xlu1 %535  ;;  %v530_v33 = vpop.xlane.xlu0 %529 }
  0x8f   :  { %v1596_v55 = vrot.slane %v530_v33, %v3386_v40  ;;  %v1608_v59 = vrot.slane %v536_v32, %v3395_v43  ;;  %v765_v33 = vsel %vm527_vm0, %v350_v16, -inf }
  0x91   :  { %742 = vmax.xlane.f32.xlu1 %v741_v34  ;;  %739 = vmax.xlane.f32.xlu0 %v738_v35  ;;  %v351_v34 = vmax.f32 %v95_v25, 0.0 }
  0x92   :  { %v539_v49 = vpop.xlane.xlu1 %538  ;;  %v533_v50 = vpop.xlane.xlu0 %532 }
  0x93   :  { %v1615_v56 = vrot.slane %v539_v49, %v3389_v41  ;;  %v1601_v57 = vrot.slane %v533_v50, %v3392_v42  ;;  %v3473_v49 = vsub.s32 %v1660_v30, %v3369_v26  ;;  %v97_v50 = vld [vmem:[%s4951_s0 + $0x290] sm:$0xff] }
  0x95   :  { %v1603_v61 = vsel %vm1602_vm1, %v1601_v57, %v1596_v55  ;;  %748 = vmax.xlane.f32.xlu1 %v747_v44  ;;  %745 = vmax.xlane.f32.xlu0 %v744_v45  ;;  %v1674_v44 = vadd.s32 4294967200, %v3359_v19  ;;  %v98_v45 = vld [vmem:[%s4951_s0 + $0x298] sm:$0xff]  ;;  %v768_v55 = vsel %vm527_vm0, %v351_v34, -inf  ;;  %v103_v34 = vld [vmem:[%s4951_s0 + $0x2c0] sm:$0xff] }
  0x96   :  { %v1610_v1 = vsel %vm1609_vm2, %v1608_v59, %v1603_v61  ;;  %v545_v2 = vpop.xlane.xlu1 %544  ;;  %v542_v3 = vpop.xlane.xlu0 %541 }
  0x97   :  { %v1629_v8 = vrot.slane %v545_v2, %v3403_v51  ;;  %v1617_v9 = vsel %vm1616_vm3, %v1615_v56, %v1610_v1  ;;  %v1622_v10 = vrot.slane %v542_v3, %v3406_v52  ;;  %v354_v56 = vmax.f32 %v98_v45, 0.0  ;;  %v100_v3 = vld [vmem:[%s4951_s0 + $0x2a8] sm:$0xff] }
  0x98   :  { %v3486_v61 = vsub.s32 %v1674_v44, %v3369_v26  ;;  %v1695_v1 = vadd.s32 4294967176, %v3359_v19  ;;  %v1688_v2 = vadd.s32 4294967184, %v3359_v19  ;;  %v356_v12 = vmax.f32 %v100_v3, 0.0  ;;  %v107_v3 = vld [vmem:[%s4951_s0 + $0x2e0] sm:$0xff] }
  0x99   :  { %v1624_v14 = vsel %vm1623_vm4, %v1622_v10, %v1617_v9  ;;  %754 = vmax.xlane.f32.xlu1 %v753_v62  ;;  %751 = vmax.xlane.f32.xlu0 %v750_v63  ;;  %v353_v62 = vmax.f32 %v97_v50, 0.0  ;;  %v777_v7 = vsel %vm527_vm0, %v354_v56, -inf }
  0x9a   :  { %v551_v18 = vpop.xlane.xlu1 %550  ;;  %v1631_v20 = vsel %vm1630_vm5, %v1629_v8, %v1624_v14  ;;  %v548_v21 = vpop.xlane.xlu0 %547  ;;  %v102_v14 = vld [vmem:[%s4951_s0 + $0x2b8] sm:$0xff]  ;;  %v3508_v17 = vsub.s32 %v1695_v1, %v3369_v26  ;;  %v783_v29 = vsel %vm527_vm0, %v356_v12, -inf  ;;  %v363_v12 = vmax.f32 %v107_v3, 0.0  ;;  %v116_v3 = vld [vmem:[%s4951_s0 + $0x328] sm:$0xff] }
  0x9b   :  { %v1643_v27 = vrot.slane %v551_v18, %v3422_v4  ;;  %v1636_v28 = vrot.slane %v548_v21, %v3433_v11  ;;  %v774_v10 = vsel %vm527_vm0, %v353_v62, -inf  ;;  %v3511_v18 = vsub.s32 %v1688_v2, %v3369_v26  ;;  %v108_v2 = vld [vmem:[%s4951_s0 + $0x2e8] sm:$0xff] }
  0x9c   :  { %v358_v24 = vmax.f32 %v102_v14, 0.0 }
  0x9d   :  { %v1638_v32 = vsel %vm1637_vm6, %v1636_v28, %v1631_v20  ;;  %760 = vmax.xlane.f32.xlu1 %v759_v13  ;;  %757 = vmax.xlane.f32.xlu0 %v756_v15  ;;  %v355_v13 = vmax.f32 %v99_v5, 0.0  ;;  %v101_v20 = vld [vmem:[%s4951_s0 + $0x2b0] sm:$0xff] }
  0x9e   :  { %v557_v35 = vpop.xlane.xlu1 %556  ;;  %v1645_v36 = vsel %vm1644_vm7, %v1643_v27, %v1638_v32  ;;  %v554_v37 = vpop.xlane.xlu0 %553  ;;  %v357_v26 = vmax.f32 %v101_v20, 0.0  ;;  %v789_v44 = vsel %vm527_vm0, %v358_v24, -inf }
  0x9f   :  { %v1657_v46 = vrot.slane %v557_v35, %v3446_v22  ;;  %v1650_v47 = vrot.slane %v554_v37, %v3449_v23  ;;  %v780_v30 = vsel %vm527_vm0, %v355_v13, -inf  ;;  %v110_v13 = vld [vmem:[%s4951_s0 + $0x2f8] sm:$0xff] }
  0xa0   :  { %v786_v45 = vsel %vm527_vm0, %v357_v26, -inf }
  0xa1   :  { %v1652_v54 = vsel %vm1651_vm8, %v1650_v47, %v1645_v36  ;;  %766 = vmax.xlane.f32.xlu1 %v765_v33  ;;  %763 = vmax.xlane.f32.xlu0 %v762_v38  ;;  %v360_v36 = vmax.f32 %v104_v31, 0.0  ;;  %v106_v47 = vld [vmem:[%s4951_s0 + $0x2d8] sm:$0xff] }
  0xa2   :  { %v563_v57 = vpop.xlane.xlu1 %562  ;;  %v1659_v58 = vsel %vm1658_vm9, %v1657_v46, %v1652_v54  ;;  %v560_v59 = vpop.xlane.xlu0 %559  ;;  %v359_v46 = vmax.f32 %v103_v34, 0.0  ;;  %v105_v54 = vld [vmem:[%s4951_s0 + $0x2d0] sm:$0xff]  ;;  %v362_v56 = vmax.f32 %v106_v47, 0.0  ;;  %v114_v47 = vld [vmem:[%s4951_s0 + $0x318] sm:$0xff] }
  0xa3   :  { %v1671_v63 = vrot.slane %v563_v57, %v3470_v48  ;;  %v1664_v0 = vrot.slane %v560_v59, %v3473_v49  ;;  %v795_v59 = vsel %vm527_vm0, %v360_v36, -inf }
  0xa4   :  { %v792_v62 = vsel %vm527_vm0, %v359_v46, -inf }
  0xa5   :  { %v1666_v6 = vsel %vm4956_vm10, %v1664_v0, %v1659_v58  ;;  %772 = vmax.xlane.f32.xlu1 %v771_v53  ;;  %769 = vmax.xlane.f32.xlu0 %v768_v55 }
  0xa6   :  { %v569_v8 = vpop.xlane.xlu1 %568  ;;  %v1673_v9 = vsel %vm1672_vm11, %v1671_v63, %v1666_v6  ;;  %v566_v19 = vpop.xlane.xlu0 %565  ;;  %v361_v63 = vmax.f32 %v105_v54, 0.0  ;;  %v801_v6 = vsel %vm527_vm0, %v362_v56, -inf  ;;  %v113_v54 = vld [vmem:[%s4951_s0 + $0x310] sm:$0xff]  ;;  %v370_v56 = vmax.f32 %v114_v47, 0.0 }
  0xa7   :  { %v1685_v15 = vrot.slane %v569_v8, %v3483_v60  ;;  %v1678_v16 = vrot.slane %v566_v19, %v3486_v61 }
  0xa8   :  { %v798_v19 = vsel %vm527_vm0, %v361_v63, -inf }
  0xa9   :  { %v1680_v21 = vsel %vm4955_vm12, %v1678_v16, %v1673_v9  ;;  %778 = vmax.xlane.f32.xlu1 %v777_v7  ;;  %775 = vmax.xlane.f32.xlu0 %v774_v10  ;;  %v364_v10 = vmax.f32 %v108_v2, 0.0  ;;  %v109_v16 = vld [vmem:[%s4951_s0 + $0x2f0] sm:$0xff] }
  0xaa   :  { %v575_v25 = vpop.xlane.xlu1 %574  ;;  %v1687_v27 = vsel %vm1686_vm13, %v1685_v15, %v1680_v21  ;;  %v572_v28 = vpop.xlane.xlu0 %571  ;;  %v366_v21 = vmax.f32 %v110_v13, 0.0 }
  0xab   :  { %v1699_v32 = vrot.slane %v575_v25, %v3508_v17  ;;  %v1692_v33 = vrot.slane %v572_v28, %v3511_v18  ;;  %v807_v28 = vsel %vm527_vm0, %v364_v10, -inf }
  0xad   :  { %v1694_v35 = vsel %vm1693_vm14, %v1692_v33, %v1687_v27  ;;  %784 = vmax.xlane.f32.xlu1 %v783_v29  ;;  %781 = vmax.xlane.f32.xlu0 %v780_v30  ;;  %v804_v29 = vsel %vm527_vm0, %v363_v12, -inf  ;;  %v365_v30 = vmax.f32 %v109_v16, 0.0  ;;  %v111_v33 = vld [vmem:[%s4951_s0 + $0x300] sm:$0xff]  ;;  %v372_v12 = vmax.f32 %v116_v3, 0.0  ;;  %v124_v3 = vld [vmem:[%s4951_s0 + $0x368] sm:$0xff] }
  0xae   :  { %v3530_v37 = vsel %vm1700_vm15, %v1699_v32, %v1694_v35  ;;  %v581_v38 = vpop.xlane.xlu1 %580  ;;  %v578_v39 = vpop.xlane.xlu0 %577  ;;  %v112_v32 = vld [vmem:[%s4951_s0 + $0x308] sm:$0xff]  ;;  %v813_v35 = vsel %vm527_vm0, %v366_v21, -inf  ;;  %v367_v46 = vmax.f32 %v111_v33, 0.0 }
  0xaf   :  { %v1709_v50 = vrot.slane %v581_v38, %v3392_v42  ;;  %v1705_v53 = vrot.slane %v578_v39, %v3386_v40  ;;  %v120_v33 = vld [vmem:[%s4951_s0 + $0x348] sm:$0xff] }
  0xb0   :  { %v816_v63 = vsel %vm527_vm0, %v367_v46, -inf  ;;  %v376_v46 = vmax.f32 %v120_v33, 0.0  ;;  %v159_v33 = vld [vmem:[%s4951_s0 + $0x480] sm:$0xff] }
  0xb1   :  { %v1710_v55 = vsel %vm1602_vm1, %v1709_v50, %v1705_v53  ;;  %790 = vmax.xlane.f32.xlu1 %v789_v44  ;;  %787 = vmax.xlane.f32.xlu0 %v786_v45  ;;  %v810_v44 = vsel %vm527_vm0, %v365_v30, -inf  ;;  %v368_v45 = vmax.f32 %v112_v32, 0.0 }
  0xb2   :  { %v587_v57 = vpop.xlane.xlu1 %586  ;;  %v584_v58 = vpop.xlane.xlu0 %583 }
  0xb3   :  { %v1719_v0 = vrot.slane %v587_v57, %v3389_v41  ;;  %v1714_v1 = vrot.slane %v584_v58, %v3395_v43 }
  0xb5   :  { %v1715_v5 = vsel %vm1609_vm2, %v1714_v1, %v1710_v55  ;;  %796 = vmax.xlane.f32.xlu1 %v795_v59  ;;  %793 = vmax.xlane.f32.xlu0 %v792_v62  ;;  %v819_v62 = vsel %vm527_vm0, %v368_v45, -inf }
  0xb6   :  { %v593_v7 = vpop.xlane.xlu1 %592  ;;  %v1720_v8 = vsel %vm1616_vm3, %v1719_v0, %v1715_v5  ;;  %v590_v9 = vpop.xlane.xlu0 %589  ;;  %v369_v0 = vmax.f32 %v113_v54, 0.0  ;;  %v115_v5 = vld [vmem:[%s4951_s0 + $0x320] sm:$0xff] }
  0xb7   :  { %v1729_v14 = vrot.slane %v593_v7, %v3403_v51  ;;  %v1724_v15 = vrot.slane %v590_v9, %v3406_v52  ;;  %v825_v7 = vsel %vm527_vm0, %v370_v56, -inf  ;;  %v371_v13 = vmax.f32 %v115_v5, 0.0  ;;  %v123_v5 = vld [vmem:[%s4951_s0 + $0x360] sm:$0xff] }
  0xb8   :  { %v822_v10 = vsel %vm527_vm0, %v369_v0, -inf }
  0xb9   :  { %v1725_v20 = vsel %vm1623_vm4, %v1724_v15, %v1720_v8  ;;  %802 = vmax.xlane.f32.xlu1 %v801_v6  ;;  %799 = vmax.xlane.f32.xlu0 %v798_v19  ;;  %v828_v30 = vsel %vm527_vm0, %v371_v13, -inf  ;;  %v379_v13 = vmax.f32 %v123_v5, 0.0 }
  0xba   :  { %v599_v24 = vpop.xlane.xlu1 %598  ;;  %v1730_v25 = vsel %vm1630_vm5, %v1729_v14, %v1725_v20  ;;  %v596_v27 = vpop.xlane.xlu0 %595  ;;  %v118_v14 = vld [vmem:[%s4951_s0 + $0x338] sm:$0xff]  ;;  %v117_v20 = vld [vmem:[%s4951_s0 + $0x330] sm:$0xff] }
  0xbb   :  { %v1739_v26 = vrot.slane %v599_v24, %v3422_v4  ;;  %v1734_v31 = vrot.slane %v596_v27, %v3433_v11  ;;  %v374_v24 = vmax.f32 %v118_v14, 0.0  ;;  %v128_v14 = vld [vmem:[%s4951_s0 + $0x388] sm:$0xff] }
  0xbd   :  { %v1735_v34 = vsel %vm1637_vm6, %v1734_v31, %v1730_v25  ;;  %808 = vmax.xlane.f32.xlu1 %v807_v28  ;;  %805 = vmax.xlane.f32.xlu0 %v804_v29  ;;  %v831_v29 = vsel %vm527_vm0, %v372_v12, -inf  ;;  %v380_v12 = vmax.f32 %v124_v3, 0.0 }
  0xbe   :  { %v605_v36 = vpop.xlane.xlu1 %604  ;;  %v1740_v38 = vsel %vm1644_vm7, %v1739_v26, %v1735_v34  ;;  %v602_v39 = vpop.xlane.xlu0 %601  ;;  %v373_v26 = vmax.f32 %v117_v20, 0.0  ;;  %v119_v34 = vld [vmem:[%s4951_s0 + $0x340] sm:$0xff] }
  0xbf   :  { %v1749_v50 = vrot.slane %v605_v36, %v3446_v22  ;;  %v1744_v53 = vrot.slane %v602_v39, %v3449_v23  ;;  %v837_v36 = vsel %vm527_vm0, %v374_v24, -inf  ;;  %v375_v47 = vmax.f32 %v119_v34, 0.0  ;;  %v127_v20 = vld [vmem:[%s4951_s0 + $0x380] sm:$0xff]  ;;  %v129_v34 = vld [vmem:[%s4951_s0 + $0x390] sm:$0xff] }
  0xc0   :  { %v834_v45 = vsel %vm527_vm0, %v373_v26, -inf  ;;  %v384_v24 = vmax.f32 %v128_v14, 0.0  ;;  %v383_v26 = vmax.f32 %v127_v20, 0.0 }
  0xc1   :  { %v1745_v55 = vsel %vm1651_vm8, %v1744_v53, %v1740_v38  ;;  %814 = vmax.xlane.f32.xlu1 %v813_v35  ;;  %811 = vmax.xlane.f32.xlu0 %v810_v44 }
  0xc2   :  { %v611_v57 = vpop.xlane.xlu1 %610  ;;  %v1750_v58 = vsel %vm1658_vm9, %v1749_v50, %v1745_v55  ;;  %v608_v59 = vpop.xlane.xlu0 %607  ;;  %v122_v50 = vld [vmem:[%s4951_s0 + $0x358] sm:$0xff]  ;;  %v121_v55 = vld [vmem:[%s4951_s0 + $0x350] sm:$0xff] }
  0xc3   :  { %v1759_v1 = vrot.slane %v611_v57, %v3470_v48  ;;  %v1754_v2 = vrot.slane %v608_v59, %v3473_v49  ;;  %v378_v57 = vmax.f32 %v122_v50, 0.0  ;;  %v377_v0 = vmax.f32 %v121_v55, 0.0 }
  0xc4   :  { %v385_v50 = vmax.f32 %v129_v34, 0.0 }
  0xc5   :  { %v1755_v6 = vsel %vm4956_vm10, %v1754_v2, %v1750_v58  ;;  %820 = vmax.xlane.f32.xlu1 %v819_v62  ;;  %817 = vmax.xlane.f32.xlu0 %v816_v63  ;;  %v843_v62 = vsel %vm527_vm0, %v376_v46, -inf  ;;  %v840_v63 = vsel %vm527_vm0, %v375_v47, -inf  ;;  %v864_v46 = vsel %vm527_vm0, %v383_v26, -inf }
  0xc6   :  { %v617_v8 = vpop.xlane.xlu1 %616  ;;  %v1760_v9 = vsel %vm1672_vm11, %v1759_v1, %v1755_v6  ;;  %v614_v19 = vpop.xlane.xlu0 %613  ;;  %v415_v47 = vmax.f32 %v159_v33, 0.0 }
  0xc7   :  { %v1769_v15 = vrot.slane %v617_v8, %v3483_v60  ;;  %v1764_v16 = vrot.slane %v614_v19, %v3486_v61 }
  0xc9   :  { %v1765_v21 = vsel %vm4955_vm12, %v1764_v16, %v1760_v9  ;;  %826 = vmax.xlane.f32.xlu1 %v825_v7  ;;  %823 = vmax.xlane.f32.xlu0 %v822_v10  ;;  %v849_v7 = vsel %vm527_vm0, %v378_v57, -inf  ;;  %v846_v10 = vsel %vm527_vm0, %v377_v0, -inf  ;;  %v960_v0 = vsel %vm527_vm0, %v415_v47, -inf }
  0xca   :  { %v623_v25 = vpop.xlane.xlu1 %622  ;;  %v1770_v27 = vsel %vm1686_vm13, %v1769_v15, %v1765_v21  ;;  %v620_v28 = vpop.xlane.xlu0 %619 }
  0xcb   :  { %v1779_v31 = vrot.slane %v623_v25, %v3508_v17  ;;  %v1774_v32 = vrot.slane %v620_v28, %v3511_v18 }
  0xcd   :  { %v1775_v35 = vsel %vm1693_vm14, %v1774_v32, %v1770_v27  ;;  %832 = vmax.xlane.f32.xlu1 %v831_v29  ;;  %829 = vmax.xlane.f32.xlu0 %v828_v30  ;;  %v855_v29 = vsel %vm527_vm0, %v380_v12, -inf  ;;  %v852_v30 = vsel %vm527_vm0, %v379_v13, -inf }
  0xce   :  { %v3628_v38 = vsel %vm1700_vm15, %v1779_v31, %v1775_v35  ;;  %v629_v39 = vpop.xlane.xlu1 %628  ;;  %v626_v44 = vpop.xlane.xlu0 %625 }
  0xcf   :  { %v1788_v53 = vrot.slane %v629_v39, %v3392_v42  ;;  %v1784_v54 = vrot.slane %v626_v44, %v3386_v40 }
  0xd1   :  { %v1789_v56 = vsel %vm1602_vm1, %v1788_v53, %v1784_v54  ;;  %838 = vmax.xlane.f32.xlu1 %v837_v36  ;;  %835 = vmax.xlane.f32.xlu0 %v834_v45  ;;  %v867_v36 = vsel %vm527_vm0, %v384_v24, -inf  ;;  %v130_v53 = vld [vmem:[%s4951_s0 + $0x398] sm:$0xff]  ;;  %v161_v24 = vld [vmem:[%s4951_s0 + $0x490] sm:$0xff] }
  0xd2   :  { %v635_v58 = vpop.xlane.xlu1 %634  ;;  %v632_v59 = vpop.xlane.xlu0 %631 }
  0xd3   :  { %v1798_v1 = vrot.slane %v635_v58, %v3389_v41  ;;  %v1793_v2 = vrot.slane %v632_v59, %v3395_v43  ;;  %v386_v58 = vmax.f32 %v130_v53, 0.0 }
  0xd5   :  { %v1794_v6 = vsel %vm1609_vm2, %v1793_v2, %v1789_v56  ;;  %844 = vmax.xlane.f32.xlu1 %v843_v62  ;;  %841 = vmax.xlane.f32.xlu0 %v840_v63  ;;  %v160_v56 = vld [vmem:[%s4951_s0 + $0x488] sm:$0xff] }
  0xd6   :  { %v641_v8 = vpop.xlane.xlu1 %640  ;;  %v1799_v9 = vsel %vm1616_vm3, %v1798_v1, %v1794_v6  ;;  %v638_v19 = vpop.xlane.xlu0 %637  ;;  %v870_v1 = vsel %vm527_vm0, %v385_v50, -inf  ;;  %v416_v2 = vmax.f32 %v160_v56, 0.0  ;;  %v144_v6 = vld [vmem:[%s4951_s0 + $0x408] sm:$0xff] }
  0xd7   :  { %v1808_v15 = vrot.slane %v641_v8, %v3403_v51  ;;  %v1803_v16 = vrot.slane %v638_v19, %v3406_v52  ;;  %v400_v14 = vmax.f32 %v144_v6, 0.0 }
  0xd8   :  { %v963_v13 = vsel %vm527_vm0, %v416_v2, -inf }
  0xd9   :  { %v1804_v21 = vsel %vm1623_vm4, %v1803_v16, %v1799_v9  ;;  %850 = vmax.xlane.f32.xlu1 %v849_v7  ;;  %847 = vmax.xlane.f32.xlu0 %v846_v10  ;;  %v143_v7 = vld [vmem:[%s4951_s0 + $0x400] sm:$0xff]  ;;  %v873_v9 = vsel %vm527_vm0, %v386_v58, -inf  ;;  %v915_v26 = vsel %vm527_vm0, %v400_v14, -inf }
  0xda   :  { %v647_v25 = vpop.xlane.xlu1 %646  ;;  %v1809_v27 = vsel %vm1630_vm5, %v1808_v15, %v1804_v21  ;;  %v644_v28 = vpop.xlane.xlu0 %643  ;;  %v399_v15 = vmax.f32 %v143_v7, 0.0  ;;  %v191_v16 = vld [vmem:[%s4951_s0 + $0x580] sm:$0xff]  ;;  %v176_v7 = vld [vmem:[%s4951_s0 + $0x508] sm:$0xff] }
  0xdb   :  { %v1818_v31 = vrot.slane %v647_v25, %v3422_v4  ;;  %v1813_v32 = vrot.slane %v644_v28, %v3433_v11 }
  0xdd   :  { %v1814_v35 = vsel %vm1637_vm6, %v1813_v32, %v1809_v27  ;;  %856 = vmax.xlane.f32.xlu1 %v855_v29  ;;  %853 = vmax.xlane.f32.xlu0 %v852_v30  ;;  %v447_v27 = vmax.f32 %v191_v16, 0.0  ;;  %v417_v32 = vmax.f32 %v161_v24, 0.0 }
  0xde   :  { %v653_v39 = vpop.xlane.xlu1 %652  ;;  %v1819_v44 = vsel %vm1644_vm7, %v1818_v31, %v1814_v35  ;;  %v650_v45 = vpop.xlane.xlu0 %649  ;;  %v912_v31 = vsel %vm527_vm0, %v399_v15, -inf  ;;  %v131_v35 = vld [vmem:[%s4951_s0 + $0x3a0] sm:$0xff]  ;;  %v432_v15 = vmax.f32 %v176_v7, 0.0 }
  0xdf   :  { %v1828_v54 = vrot.slane %v653_v39, %v3446_v22  ;;  %v1823_v55 = vrot.slane %v650_v45, %v3449_v23  ;;  %v966_v50 = vsel %vm527_vm0, %v417_v32, -inf  ;;  %v387_v53 = vmax.f32 %v131_v35, 0.0 }
  0xe1   :  { %v1824_v57 = vsel %vm1651_vm8, %v1823_v55, %v1819_v44  ;;  %868 = vmax.xlane.f32.xlu1 %v867_v36  ;;  %865 = vmax.xlane.f32.xlu0 %v864_v46  ;;  %v192_v36 = vld [vmem:[%s4951_s0 + $0x588] sm:$0xff]  ;;  %v1056_v44 = vsel %vm527_vm0, %v447_v27, -inf  ;;  %v162_v55 = vld [vmem:[%s4951_s0 + $0x498] sm:$0xff]  ;;  %v876_v2 = vsel %vm527_vm0, %v387_v53, -inf }
  0xe2   :  { %v659_v59 = vpop.xlane.xlu1 %658  ;;  %v1829_v62 = vsel %vm1658_vm9, %v1828_v54, %v1824_v57  ;;  %v656_v63 = vpop.xlane.xlu0 %655  ;;  %v448_v54 = vmax.f32 %v192_v36, 0.0  ;;  %v132_v36 = vld [vmem:[%s4951_s0 + $0x3a8] sm:$0xff] }
  0xe3   :  { %v1838_v3 = vrot.slane %v659_v59, %v3470_v48  ;;  %v1833_v5 = vrot.slane %v656_v63, %v3473_v49  ;;  %v145_v59 = vld [vmem:[%s4951_s0 + $0x410] sm:$0xff]  ;;  %v418_v63 = vmax.f32 %v162_v55, 0.0 }
  0xe5   :  { %v1834_v8 = vsel %vm4956_vm10, %v1833_v5, %v1829_v62  ;;  %961 = vmax.xlane.f32.xlu1 %v960_v0  ;;  %871 = vmax.xlane.f32.xlu0 %v870_v1 }
  0xe6   :  { %v665_v19 = vpop.xlane.xlu1 %664  ;;  %v1839_v10 = vsel %vm1672_vm11, %v1838_v3, %v1834_v8  ;;  %v662_v12 = vpop.xlane.xlu0 %661  ;;  %v401_v3 = vmax.f32 %v145_v59, 0.0  ;;  %v175_v8 = vld [vmem:[%s4951_s0 + $0x500] sm:$0xff] }
  0xe7   :  { %v1848_v20 = vrot.slane %v665_v19, %v3483_v60  ;;  %v1843_v21 = vrot.slane %v662_v12, %v3486_v61  ;;  %v969_v19 = vsel %vm527_vm0, %v418_v63, -inf  ;;  %v431_v16 = vmax.f32 %v175_v8, 0.0 }
  0xe8   :  { %v918_v14 = vsel %vm527_vm0, %v401_v3, -inf }
  0xe9   :  { %v1844_v25 = vsel %vm4955_vm12, %v1843_v21, %v1839_v10  ;;  %874 = vmax.xlane.f32.xlu1 %v873_v9  ;;  %964 = vmax.xlane.f32.xlu0 %v963_v13  ;;  %vm2887_vm12 = vcmask 1041409   ;;  %v1008_v32 = vsel %vm527_vm0, %v431_v16, -inf }
  0xea   :  { %v671_v28 = vpop.xlane.xlu1 %670  ;;  %v1849_v29 = vsel %vm1686_vm13, %v1848_v20, %v1844_v25  ;;  %v668_v30 = vpop.xlane.xlu0 %667  ;;  %v223_v20 = vld [vmem:[%s4951_s0 + $0x680] sm:$0xff]  ;;  %v193_v25 = vld [vmem:[%s4951_s0 + $0x590] sm:$0xff] }
  0xeb   :  { %v1858_v33 = vrot.slane %v671_v28, %v3508_v17  ;;  %v1853_v34 = vrot.slane %v668_v30, %v3511_v18  ;;  %v479_v28 = vmax.f32 %v223_v20, 0.0 }
  0xed   :  { %v1854_v39 = vsel %vm1693_vm14, %v1853_v34, %v1849_v29  ;;  %916 = vmax.xlane.f32.xlu1 %v915_v26  ;;  %913 = vmax.xlane.f32.xlu0 %v912_v31  ;;  %v1011_v31 = vsel %vm527_vm0, %v432_v15, -inf }
  0xee   :  { %v1859_v45 = vsel %vm1700_vm15, %v1858_v33, %v1854_v39  ;;  %v677_v46 = vpop.xlane.xlu1 %676  ;;  %v674_v47 = vpop.xlane.xlu0 %673  ;;  %v449_v33 = vmax.f32 %v193_v25, 0.0  ;;  %v224_v39 = vld [vmem:[%s4951_s0 + $0x688] sm:$0xff] }
  0xef   :  { %v3731_v56 = vsel %vm2887_vm12, %v1859_v45, %v3530_v37  ;;  %v1867_v57 = vrot.slane %v677_v46, %v3392_v42  ;;  %v1863_v58 = vrot.slane %v674_v47, %v3386_v40  ;;  %v1059_v37 = vsel %vm527_vm0, %v448_v54, -inf }
  0xf0   :  { %v1152_v45 = vsel %vm527_vm0, %v479_v28, -inf  ;;  %v1062_v53 = vsel %vm527_vm0, %v449_v33, -inf  ;;  %v388_v54 = vmax.f32 %v132_v36, 0.0  ;;  %v480_v55 = vmax.f32 %v224_v39, 0.0  ;;  %v207_v28 = vld [vmem:[%s4951_s0 + $0x600] sm:$0xff] }
  0xf1   :  { %v1868_v62 = vsel %vm1602_vm1, %v1867_v57, %v1863_v58  ;;  %1057 = vmax.xlane.f32.xlu1 %v1056_v44  ;;  %967 = vmax.xlane.f32.xlu0 %v966_v50  ;;  %v163_v57 = vld [vmem:[%s4951_s0 + $0x4a0] sm:$0xff] }
  0xf2   :  { %v683_v0 = vpop.xlane.xlu1 %682  ;;  %v680_v1 = vpop.xlane.xlu0 %679  ;;  %v879_v3 = vsel %vm527_vm0, %v388_v54, -inf }
  0xf3   :  { %v1877_v5 = vrot.slane %v683_v0, %v3389_v41  ;;  %v1872_v6 = vrot.slane %v680_v1, %v3395_v43  ;;  %v419_v0 = vmax.f32 %v163_v57, 0.0 }
  0xf5   :  { %v1873_v9 = vsel %vm1609_vm2, %v1872_v6, %v1868_v62  ;;  %877 = vmax.xlane.f32.xlu1 %v876_v2  ;;  %1060 = vmax.xlane.f32.xlu0 %v1059_v37  ;;  %v146_v62 = vld [vmem:[%s4951_s0 + $0x418] sm:$0xff] }
  0xf6   :  { %v689_v10 = vpop.xlane.xlu1 %688  ;;  %v1878_v12 = vsel %vm1616_vm3, %v1877_v5, %v1873_v9  ;;  %v686_v13 = vpop.xlane.xlu0 %685  ;;  %v1155_v5 = vsel %vm527_vm0, %v480_v55, -inf  ;;  %v402_v6 = vmax.f32 %v146_v62, 0.0  ;;  %v194_v9 = vld [vmem:[%s4951_s0 + $0x598] sm:$0xff] }
  0xf7   :  { %v1887_v21 = vrot.slane %v689_v10, %v3403_v51  ;;  %v1882_v24 = vrot.slane %v686_v13, %v3406_v52  ;;  %v450_v20 = vmax.f32 %v194_v9, 0.0 }
  0xf8   :  { %v921_v16 = vsel %vm527_vm0, %v402_v6, -inf }
  0xf9   :  { %v1883_v27 = vsel %vm1623_vm4, %v1882_v24, %v1878_v12  ;;  %970 = vmax.xlane.f32.xlu1 %v969_v19  ;;  %919 = vmax.xlane.f32.xlu0 %v918_v14  ;;  %v177_v19 = vld [vmem:[%s4951_s0 + $0x510] sm:$0xff]  ;;  %v972_v12 = vsel %vm527_vm0, %v419_v0, -inf  ;;  %v208_v24 = vld [vmem:[%s4951_s0 + $0x608] sm:$0xff]  ;;  %v1065_v33 = vsel %vm527_vm0, %v450_v20, -inf }
  0xfa   :  { %v695_v29 = vpop.xlane.xlu1 %694  ;;  %v1888_v30 = vsel %vm1630_vm5, %v1887_v21, %v1883_v27  ;;  %v692_v26 = vpop.xlane.xlu0 %691  ;;  %v433_v21 = vmax.f32 %v177_v19, 0.0  ;;  %v164_v19 = vld [vmem:[%s4951_s0 + $0x4a8] sm:$0xff] }
  0xfb   :  { %v1897_v34 = vrot.slane %v695_v29, %v3422_v4  ;;  %v1892_v35 = vrot.slane %v692_v26, %v3433_v11 }
  0xfd   :  { %v1893_v44 = vsel %vm1637_vm6, %v1892_v35, %v1888_v30  ;;  %1012 = vmax.xlane.f32.xlu1 %v1011_v31  ;;  %1009 = vmax.xlane.f32.xlu0 %v1008_v32  ;;  %v464_v30 = vmax.f32 %v208_v24, 0.0  ;;  %v463_v35 = vmax.f32 %v207_v28, 0.0 }
  0xfe   :  { %v701_v46 = vpop.xlane.xlu1 %700  ;;  %v1898_v47 = vsel %vm1644_vm7, %v1897_v34, %v1893_v44  ;;  %v698_v50 = vpop.xlane.xlu0 %697  ;;  %v1014_v34 = vsel %vm527_vm0, %v433_v21, -inf  ;;  %v255_v44 = vld [vmem:[%s4951_s0 + $0x780] sm:$0xff]  ;;  %v420_v21 = vmax.f32 %v164_v19, 0.0 }
  0xff   :  { %v1907_v58 = vrot.slane %v701_v46, %v3446_v22  ;;  %v1902_v59 = vrot.slane %v698_v50, %v3449_v23  ;;  %v1104_v55 = vsel %vm527_vm0, %v463_v35, -inf  ;;  %v511_v57 = vmax.f32 %v255_v44, 0.0 }
 0x101   :  { %v1903_v63 = vsel %vm1651_vm8, %v1902_v59, %v1898_v47  ;;  %1153 = vmax.xlane.f32.xlu1 %v1152_v45  ;;  %1063 = vmax.xlane.f32.xlu0 %v1062_v53  ;;  %v225_v45 = vld [vmem:[%s4951_s0 + $0x690] sm:$0xff]  ;;  %v1107_v47 = vsel %vm527_vm0, %v464_v30, -inf  ;;  %v1248_v6 = vsel %vm527_vm0, %v511_v57, -inf }
 0x102   :  { %v707_v1 = vpop.xlane.xlu1 %706  ;;  %v1908_v2 = vsel %vm1658_vm9, %v1907_v58, %v1903_v63  ;;  %v704_v37 = vpop.xlane.xlu0 %703  ;;  %v481_v58 = vmax.f32 %v225_v45, 0.0  ;;  %v133_v59 = vld [vmem:[%s4951_s0 + $0x3b0] sm:$0xff]  ;;  %v226_v45 = vld [vmem:[%s4951_s0 + $0x698] sm:$0xff] }
 0x103   :  { %v1917_v7 = vrot.slane %v707_v1, %v3470_v48  ;;  %v1912_v8 = vrot.slane %v704_v37, %v3473_v49  ;;  %v256_v1 = vld [vmem:[%s4951_s0 + $0x788] sm:$0xff]  ;;  %v389_v37 = vmax.f32 %v133_v59, 0.0 }
 0x105   :  { %v1913_v10 = vsel %vm4956_vm10, %v1912_v8, %v1908_v2  ;;  %880 = vmax.xlane.f32.xlu1 %v879_v3  ;;  %1156 = vmax.xlane.f32.xlu0 %v1155_v5  ;;  %vm4957_vm10 = vcmask 851712  }
 0x106   :  { %v713_v13 = vpop.xlane.xlu1 %712  ;;  %v1918_v14 = vsel %vm1672_vm11, %v1917_v7, %v1913_v10  ;;  %v710_v15 = vpop.xlane.xlu0 %709  ;;  %v512_v7 = vmax.f32 %v256_v1, 0.0  ;;  %v147_v10 = vld [vmem:[%s4951_s0 + $0x420] sm:$0xff] }
 0x107   :  { %v1927_v25 = vrot.slane %v713_v13, %v3483_v60  ;;  %v1922_v27 = vrot.slane %v710_v15, %v3486_v61  ;;  %v882_v13 = vsel %vm527_vm0, %v389_v37, -inf  ;;  %v403_v24 = vmax.f32 %v147_v10, 0.0 }
 0x108   :  { %v1251_v20 = vsel %vm527_vm0, %v512_v7, -inf }
 0x109   :  { %v1923_v29 = vsel %vm4957_vm10, %v1922_v27, %v1918_v14  ;;  %973 = vmax.xlane.f32.xlu1 %v972_v12  ;;  %922 = vmax.xlane.f32.xlu0 %v921_v16  ;;  %v924_v35 = vsel %vm527_vm0, %v403_v24, -inf  ;;  %vm4958_vm10 = vcmask 720512  }
 0x10a   :  { %v719_v26 = vpop.xlane.xlu1 %718  ;;  %v1928_v31 = vsel %vm1686_vm13, %v1927_v25, %v1923_v29  ;;  %v716_v32 = vpop.xlane.xlu0 %715  ;;  %v195_v25 = vld [vmem:[%s4951_s0 + $0x5a0] sm:$0xff]  ;;  %v178_v29 = vld [vmem:[%s4951_s0 + $0x518] sm:$0xff] }
 0x10b   :  { %v1937_v36 = vrot.slane %v719_v26, %v3508_v17  ;;  %v1932_v39 = vrot.slane %v716_v32, %v3511_v18  ;;  %v451_v26 = vmax.f32 %v195_v25, 0.0 }
 0x10d   :  { %v1933_v46 = vsel %vm1693_vm14, %v1932_v39, %v1928_v31  ;;  %1066 = vmax.xlane.f32.xlu1 %v1065_v33  ;;  %1015 = vmax.xlane.f32.xlu0 %v1014_v34  ;;  %v975_v34 = vsel %vm527_vm0, %v420_v21, -inf }
 0x10e   :  { %v1938_v50 = vsel %vm1700_vm15, %v1937_v36, %v1933_v46  ;;  %v725_v53 = vpop.xlane.xlu1 %724  ;;  %v722_v54 = vpop.xlane.xlu0 %721  ;;  %v434_v36 = vmax.f32 %v178_v29, 0.0  ;;  %v209_v46 = vld [vmem:[%s4951_s0 + $0x610] sm:$0xff] }
 0x10f   :  { %v3830_v62 = vsel %vm2887_vm12, %v1938_v50, %v3628_v38  ;;  %v1946_v63 = vrot.slane %v725_v53, %v3392_v42  ;;  %v1942_v0 = vrot.slane %v722_v54, %v3386_v40  ;;  %v1158_v38 = vsel %vm527_vm0, %v481_v58, -inf }
 0x110   :  { %v1068_v50 = vsel %vm527_vm0, %v451_v26, -inf  ;;  %v1017_v57 = vsel %vm527_vm0, %v434_v36, -inf  ;;  %v482_v58 = vmax.f32 %v226_v45, 0.0  ;;  %v465_v59 = vmax.f32 %v209_v46, 0.0  ;;  %v148_v26 = vld [vmem:[%s4951_s0 + $0x428] sm:$0xff] }
 0x111   :  { %v1947_v2 = vsel %vm1602_vm1, %v1946_v63, %v1942_v0  ;;  %1108 = vmax.xlane.f32.xlu1 %v1107_v47  ;;  %1105 = vmax.xlane.f32.xlu0 %v1104_v55  ;;  %v240_v63 = vld [vmem:[%s4951_s0 + $0x708] sm:$0xff]  ;;  %vm4959_vm12 = vcmask 851712  }
 0x112   :  { %v731_v3 = vpop.xlane.xlu1 %730  ;;  %v728_v5 = vpop.xlane.xlu0 %727  ;;  %v1161_v7 = vsel %vm527_vm0, %v482_v58, -inf }
 0x113   :  { %v1956_v8 = vrot.slane %v731_v3, %v3389_v41  ;;  %v1951_v9 = vrot.slane %v728_v5, %v3395_v43  ;;  %v496_v3 = vmax.f32 %v240_v63, 0.0 }
 0x115   :  { %v1952_v12 = vsel %vm1609_vm2, %v1951_v9, %v1947_v2  ;;  %1249 = vmax.xlane.f32.xlu1 %v1248_v6  ;;  %1159 = vmax.xlane.f32.xlu0 %v1158_v38  ;;  %v239_v2 = vld [vmem:[%s4951_s0 + $0x700] sm:$0xff] }
 0x116   :  { %v737_v14 = vpop.xlane.xlu1 %736  ;;  %v1957_v15 = vsel %vm1616_vm3, %v1956_v8, %v1952_v12  ;;  %v734_v16 = vpop.xlane.xlu0 %733  ;;  %v1110_v8 = vsel %vm527_vm0, %v465_v59, -inf  ;;  %v495_v9 = vmax.f32 %v239_v2, 0.0  ;;  %v134_v12 = vld [vmem:[%s4951_s0 + $0x3b8] sm:$0xff] }
 0x117   :  { %v1966_v27 = vrot.slane %v737_v14, %v3403_v51  ;;  %v1961_v28 = vrot.slane %v734_v16, %v3406_v52  ;;  %v390_v25 = vmax.f32 %v134_v12, 0.0 }
 0x118   :  { %v1200_v24 = vsel %vm527_vm0, %v495_v9, -inf }
 0x119   :  { %v1962_v30 = vsel %vm1623_vm4, %v1961_v28, %v1957_v15  ;;  %883 = vmax.xlane.f32.xlu1 %v882_v13  ;;  %1252 = vmax.xlane.f32.xlu0 %v1251_v20  ;;  %v257_v13 = vld [vmem:[%s4951_s0 + $0x790] sm:$0xff]  ;;  %v1203_v15 = vsel %vm527_vm0, %v496_v3, -inf  ;;  %v885_v36 = vsel %vm527_vm0, %v390_v25, -inf  ;;  %v210_v3 = vld [vmem:[%s4951_s0 + $0x618] sm:$0xff] }
 0x11a   :  { %v743_v31 = vpop.xlane.xlu1 %742  ;;  %v1967_v32 = vsel %vm1630_vm5, %v1966_v27, %v1962_v30  ;;  %v740_v33 = vpop.xlane.xlu0 %739  ;;  %v513_v27 = vmax.f32 %v257_v13, 0.0  ;;  %v165_v28 = vld [vmem:[%s4951_s0 + $0x4b0] sm:$0xff] }
 0x11b   :  { %v1976_v39 = vrot.slane %v743_v31, %v3422_v4  ;;  %v1971_v44 = vrot.slane %v740_v33, %v3433_v11 }
 0x11d   :  { %v1972_v47 = vsel %vm1637_vm6, %v1971_v44, %v1967_v32  ;;  %976 = vmax.xlane.f32.xlu1 %v975_v34  ;;  %925 = vmax.xlane.f32.xlu0 %v924_v35  ;;  %v421_v32 = vmax.f32 %v165_v28, 0.0  ;;  %v404_v44 = vmax.f32 %v148_v26, 0.0 }
 0x11e   :  { %v749_v53 = vpop.xlane.xlu1 %748  ;;  %v1977_v54 = vsel %vm1644_vm7, %v1976_v39, %v1972_v47  ;;  %v746_v55 = vpop.xlane.xlu0 %745  ;;  %v1254_v39 = vsel %vm527_vm0, %v513_v27, -inf  ;;  %v196_v47 = vld [vmem:[%s4951_s0 + $0x5a8] sm:$0xff] }
 0x11f   :  { %v1986_v0 = vrot.slane %v749_v53, %v3446_v22  ;;  %v1981_v1 = vrot.slane %v746_v55, %v3449_v23  ;;  %v927_v59 = vsel %vm527_vm0, %v404_v44, -inf  ;;  %v452_v63 = vmax.f32 %v196_v47, 0.0 }
 0x121   :  { %v1982_v37 = vsel %vm1651_vm8, %v1981_v1, %v1977_v54  ;;  %1069 = vmax.xlane.f32.xlu1 %v1068_v50  ;;  %1018 = vmax.xlane.f32.xlu0 %v1017_v57  ;;  %v179_v50 = vld [vmem:[%s4951_s0 + $0x520] sm:$0xff]  ;;  %v978_v54 = vsel %vm527_vm0, %v421_v32, -inf  ;;  %v1071_v9 = vsel %vm527_vm0, %v452_v63, -inf }
 0x122   :  { %v755_v5 = vpop.xlane.xlu1 %754  ;;  %v1987_v6 = vsel %vm1658_vm9, %v1986_v0, %v1982_v37  ;;  %v752_v38 = vpop.xlane.xlu0 %751  ;;  %v435_v0 = vmax.f32 %v179_v50, 0.0  ;;  %v227_v1 = vld [vmem:[%s4951_s0 + $0x6a0] sm:$0xff]  ;;  %v180_v50 = vld [vmem:[%s4951_s0 + $0x528] sm:$0xff] }
 0x123   :  { %v1996_v19 = vrot.slane %v755_v5, %v3470_v48  ;;  %v1991_v10 = vrot.slane %v752_v38, %v3473_v49  ;;  %v483_v38 = vmax.f32 %v227_v1, 0.0 }
 0x125   :  { %v1992_v14 = vsel %vm4958_vm10, %v1991_v10, %v1987_v6  ;;  %1162 = vmax.xlane.f32.xlu1 %v1161_v7  ;;  %1111 = vmax.xlane.f32.xlu0 %v1110_v8  ;;  %vm2889_vm10 = vcmask 1042434   ;;  %v466_v10 = vmax.f32 %v210_v3, 0.0 }
 0x126   :  { %v761_v16 = vpop.xlane.xlu1 %760  ;;  %v1997_v20 = vsel %vm1672_vm11, %v1996_v19, %v1992_v14  ;;  %v758_v21 = vpop.xlane.xlu0 %757  ;;  %v1020_v19 = vsel %vm527_vm0, %v435_v0, -inf  ;;  %v241_v14 = vld [vmem:[%s4951_s0 + $0x710] sm:$0xff]  ;;  %v436_v0 = vmax.f32 %v180_v50, 0.0 }
 0x127   :  { %v2006_v29 = vrot.slane %v761_v16, %v3483_v60  ;;  %v2001_v30 = vrot.slane %v758_v21, %v3486_v61  ;;  %v1164_v16 = vsel %vm527_vm0, %v483_v38, -inf  ;;  %v1113_v25 = vsel %vm527_vm0, %v466_v10, -inf }
 0x128   :  { %v497_v28 = vmax.f32 %v241_v14, 0.0  ;;  %v1023_v10 = vsel %vm527_vm0, %v436_v0, -inf }
 0x129   :  { %v2002_v31 = vsel %vm4959_vm12, %v2001_v30, %v1997_v20  ;;  %1204 = vmax.xlane.f32.xlu1 %v1203_v15  ;;  %1201 = vmax.xlane.f32.xlu0 %v1200_v24  ;;  %vm4960_vm12 = vcmask 720512  }
 0x12a   :  { %v767_v33 = vpop.xlane.xlu1 %766  ;;  %v2007_v34 = vsel %vm1686_vm13, %v2006_v29, %v2002_v31  ;;  %v764_v35 = vpop.xlane.xlu0 %763  ;;  %v149_v29 = vld [vmem:[%s4951_s0 + $0x430] sm:$0xff]  ;;  %v135_v31 = vld [vmem:[%s4951_s0 + $0x3c0] sm:$0xff]  ;;  %v1206_v44 = vsel %vm527_vm0, %v497_v28, -inf }
 0x12b   :  { %v2016_v45 = vrot.slane %v767_v33, %v3508_v17  ;;  %v2011_v46 = vrot.slane %v764_v35, %v3511_v18  ;;  %v405_v33 = vmax.f32 %v149_v29, 0.0 }
 0x12d   :  { %v2012_v53 = vsel %vm1693_vm14, %v2011_v46, %v2007_v34  ;;  %886 = vmax.xlane.f32.xlu1 %v885_v36  ;;  %1255 = vmax.xlane.f32.xlu0 %v1254_v39 }
 0x12e   :  { %v2017_v55 = vsel %vm1700_vm15, %v2016_v45, %v2012_v53  ;;  %v773_v57 = vpop.xlane.xlu1 %772  ;;  %v770_v58 = vpop.xlane.xlu0 %769  ;;  %v391_v45 = vmax.f32 %v135_v31, 0.0  ;;  %v166_v53 = vld [vmem:[%s4951_s0 + $0x4b8] sm:$0xff] }
 0x12f   :  { %v2025_v2 = vrot.slane %v773_v57, %v3392_v42  ;;  %v2021_v37 = vrot.slane %v770_v58, %v3386_v40  ;;  %v3934_v5 = vsel %vm2889_vm10, %v2017_v55, %v3731_v56  ;;  %v258_v56 = vld [vmem:[%s4951_s0 + $0x798] sm:$0xff]  ;;  %v930_v55 = vsel %vm527_vm0, %v405_v33, -inf  ;;  %v259_v33 = vld [vmem:[%s4951_s0 + $0x7a0] sm:$0xff] }
 0x130   :  { %v514_v27 = vmax.f32 %v258_v56, 0.0  ;;  %v888_v63 = vsel %vm527_vm0, %v391_v45, -inf  ;;  %v422_v1 = vmax.f32 %v166_v53, 0.0 }
 0x131   :  { %v2026_v6 = vsel %vm1602_vm1, %v2025_v2, %v2021_v37  ;;  %979 = vmax.xlane.f32.xlu1 %v978_v54  ;;  %928 = vmax.xlane.f32.xlu0 %v927_v59  ;;  %v211_v2 = vld [vmem:[%s4951_s0 + $0x620] sm:$0xff] }
 0x132   :  { %v779_v7 = vpop.xlane.xlu1 %778  ;;  %v776_v8 = vpop.xlane.xlu0 %775  ;;  %v1257_v39 = vsel %vm527_vm0, %v514_v27, -inf }
 0x133   :  { %v2035_v12 = vrot.slane %v779_v7, %v3389_v41  ;;  %v2030_v13 = vrot.slane %v776_v8, %v3395_v43  ;;  %v467_v7 = vmax.f32 %v211_v2, 0.0 }
 0x135   :  { %v2031_v15 = vsel %vm1609_vm2, %v2030_v13, %v2026_v6  ;;  %1072 = vmax.xlane.f32.xlu1 %v1071_v9  ;;  %1021 = vmax.xlane.f32.xlu0 %v1020_v19  ;;  %v197_v6 = vld [vmem:[%s4951_s0 + $0x5b0] sm:$0xff] }
 0x136   :  { %v785_v20 = vpop.xlane.xlu1 %784  ;;  %v2036_v21 = vsel %vm1616_vm3, %v2035_v12, %v2031_v15  ;;  %v782_v24 = vpop.xlane.xlu0 %781  ;;  %v981_v12 = vsel %vm527_vm0, %v422_v1, -inf  ;;  %v453_v13 = vmax.f32 %v197_v6, 0.0  ;;  %v242_v15 = vld [vmem:[%s4951_s0 + $0x718] sm:$0xff] }
 0x137   :  { %v2045_v30 = vrot.slane %v785_v20, %v3403_v51  ;;  %v2040_v26 = vrot.slane %v782_v24, %v3406_v52  ;;  %v498_v29 = vmax.f32 %v242_v15, 0.0  ;;  %v229_v15 = vld [vmem:[%s4951_s0 + $0x6b0] sm:$0xff] }
 0x138   :  { %v1074_v28 = vsel %vm527_vm0, %v453_v13, -inf }
 0x139   :  { %v2041_v32 = vsel %vm1623_vm4, %v2040_v26, %v2036_v21  ;;  %1165 = vmax.xlane.f32.xlu1 %v1164_v16  ;;  %1114 = vmax.xlane.f32.xlu0 %v1113_v25  ;;  %v228_v16 = vld [vmem:[%s4951_s0 + $0x6a8] sm:$0xff]  ;;  %v1116_v21 = vsel %vm527_vm0, %v467_v7, -inf  ;;  %v1209_v45 = vsel %vm527_vm0, %v498_v29, -inf  ;;  %v181_v7 = vld [vmem:[%s4951_s0 + $0x530] sm:$0xff] }
 0x13a   :  { %v791_v34 = vpop.xlane.xlu1 %790  ;;  %v2046_v35 = vsel %vm1630_vm5, %v2045_v30, %v2041_v32  ;;  %v788_v36 = vpop.xlane.xlu0 %787  ;;  %v484_v30 = vmax.f32 %v228_v16, 0.0  ;;  %v136_v26 = vld [vmem:[%s4951_s0 + $0x3c8] sm:$0xff] }
 0x13b   :  { %v2055_v46 = vrot.slane %v791_v34, %v3422_v4  ;;  %v2050_v47 = vrot.slane %v788_v36, %v3433_v11 }
 0x13d   :  { %v2051_v54 = vsel %vm1637_vm6, %v2050_v47, %v2046_v35  ;;  %1258 = vmax.xlane.f32.xlu1 %v1257_v39  ;;  %1207 = vmax.xlane.f32.xlu0 %v1206_v44  ;;  %v392_v35 = vmax.f32 %v136_v26, 0.0  ;;  %v515_v47 = vmax.f32 %v259_v33, 0.0  ;;  %v260_v33 = vld [vmem:[%s4951_s0 + $0x7a8] sm:$0xff] }
 0x13e   :  { %v797_v57 = vpop.xlane.xlu1 %796  ;;  %v2056_v58 = vsel %vm1644_vm7, %v2055_v46, %v2051_v54  ;;  %v794_v59 = vpop.xlane.xlu0 %793  ;;  %v1167_v46 = vsel %vm527_vm0, %v484_v30, -inf  ;;  %v167_v54 = vld [vmem:[%s4951_s0 + $0x4c0] sm:$0xff] }
 0x13f   :  { %v2065_v37 = vrot.slane %v797_v57, %v3446_v22  ;;  %v2060_v3 = vrot.slane %v794_v59, %v3449_v23  ;;  %v1260_v1 = vsel %vm527_vm0, %v515_v47, -inf  ;;  %v423_v2 = vmax.f32 %v167_v54, 0.0 }
 0x140   :  { %v516_v47 = vmax.f32 %v260_v33, 0.0 }
 0x141   :  { %v2061_v38 = vsel %vm1651_vm8, %v2060_v3, %v2056_v58  ;;  %931 = vmax.xlane.f32.xlu1 %v930_v55  ;;  %889 = vmax.xlane.f32.xlu0 %v888_v63  ;;  %v150_v55 = vld [vmem:[%s4951_s0 + $0x438] sm:$0xff]  ;;  %v891_v58 = vsel %vm527_vm0, %v392_v35, -inf }
 0x142   :  { %v803_v8 = vpop.xlane.xlu1 %802  ;;  %v2066_v9 = vsel %vm1658_vm9, %v2065_v37, %v2061_v38  ;;  %v800_v19 = vpop.xlane.xlu0 %799  ;;  %v406_v37 = vmax.f32 %v150_v55, 0.0  ;;  %v198_v38 = vld [vmem:[%s4951_s0 + $0x5b8] sm:$0xff] }
 0x143   :  { %v2075_v56 = vrot.slane %v803_v8, %v3470_v48  ;;  %v2070_v14 = vrot.slane %v800_v19, %v3473_v49 }
 0x144   :  { %v933_v13 = vsel %vm527_vm0, %v406_v37, -inf }
 0x145   :  { %v2071_v20 = vsel %vm4960_vm12, %v2070_v14, %v2066_v9  ;;  %1024 = vmax.xlane.f32.xlu1 %v1023_v10  ;;  %982 = vmax.xlane.f32.xlu0 %v981_v12  ;;  %vm4961_vm12 = vcmask 851712   ;;  %v984_v12 = vsel %vm527_vm0, %v423_v2, -inf  ;;  %v437_v14 = vmax.f32 %v181_v7, 0.0  ;;  %v182_v7 = vld [vmem:[%s4951_s0 + $0x538] sm:$0xff] }
 0x146   :  { %v809_v24 = vpop.xlane.xlu1 %808  ;;  %v2076_v25 = vsel %vm1672_vm11, %v2075_v56, %v2071_v20  ;;  %v806_v27 = vpop.xlane.xlu0 %805  ;;  %v454_v56 = vmax.f32 %v198_v38, 0.0  ;;  %v212_v20 = vld [vmem:[%s4951_s0 + $0x628] sm:$0xff]  ;;  %v1263_v2 = vsel %vm527_vm0, %v516_v47, -inf }
 0x147   :  { %v2085_v31 = vrot.slane %v809_v24, %v3483_v60  ;;  %v2080_v32 = vrot.slane %v806_v27, %v3486_v61  ;;  %v485_v24 = vmax.f32 %v229_v15, 0.0  ;;  %v1026_v30 = vsel %vm527_vm0, %v437_v14, -inf }
 0x148   :  { %v1077_v29 = vsel %vm527_vm0, %v454_v56, -inf  ;;  %v468_v26 = vmax.f32 %v212_v20, 0.0  ;;  %v438_v15 = vmax.f32 %v182_v7, 0.0  ;;  %v169_v7 = vld [vmem:[%s4951_s0 + $0x4d0] sm:$0xff] }
 0x149   :  { %v2081_v34 = vsel %vm4961_vm12, %v2080_v32, %v2076_v25  ;;  %1117 = vmax.xlane.f32.xlu1 %v1116_v21  ;;  %1075 = vmax.xlane.f32.xlu0 %v1074_v28 }
 0x14a   :  { %v815_v36 = vpop.xlane.xlu1 %814  ;;  %v2086_v39 = vsel %vm1686_vm13, %v2085_v31, %v2081_v34  ;;  %v812_v44 = vpop.xlane.xlu0 %811  ;;  %v243_v34 = vld [vmem:[%s4951_s0 + $0x720] sm:$0xff] }
 0x14b   :  { %v2095_v50 = vrot.slane %v815_v36, %v3508_v17  ;;  %v2090_v53 = vrot.slane %v812_v44, %v3511_v18  ;;  %v1170_v36 = vsel %vm527_vm0, %v485_v24, -inf  ;;  %v199_v24 = vld [vmem:[%s4951_s0 + $0x5c0] sm:$0xff] }
 0x14d   :  { %v2091_v57 = vsel %vm1693_vm14, %v2090_v53, %v2086_v39  ;;  %1210 = vmax.xlane.f32.xlu1 %v1209_v45  ;;  %1168 = vmax.xlane.f32.xlu0 %v1167_v46  ;;  %v1119_v46 = vsel %vm527_vm0, %v468_v26, -inf  ;;  %v151_v53 = vld [vmem:[%s4951_s0 + $0x440] sm:$0xff]  ;;  %v1029_v26 = vsel %vm527_vm0, %v438_v15, -inf }
 0x14e   :  { %v2096_v59 = vsel %vm1700_vm15, %v2095_v50, %v2091_v57  ;;  %v821_v63 = vpop.xlane.xlu1 %820  ;;  %v818_v0 = vpop.xlane.xlu0 %817  ;;  %v499_v50 = vmax.f32 %v243_v34, 0.0  ;;  %v137_v57 = vld [vmem:[%s4951_s0 + $0x3d0] sm:$0xff] }
 0x14f   :  { %v2104_v3 = vrot.slane %v821_v63, %v3392_v42  ;;  %v2100_v6 = vrot.slane %v818_v0, %v3386_v40  ;;  %v4033_v8 = vsel %vm2889_vm10, %v2096_v59, %v3830_v62  ;;  %v407_v59 = vmax.f32 %v151_v53, 0.0 }
 0x150   :  { %v1212_v37 = vsel %vm527_vm0, %v499_v50, -inf  ;;  %vm4962_vm10 = vcmask 720512  }
 0x151   :  { %v2105_v9 = vsel %vm1602_vm1, %v2104_v3, %v2100_v6  ;;  %892 = vmax.xlane.f32.xlu1 %v891_v58  ;;  %1261 = vmax.xlane.f32.xlu0 %v1260_v1  ;;  %v393_v3 = vmax.f32 %v137_v57, 0.0 }
 0x152   :  { %v827_v19 = vpop.xlane.xlu1 %826  ;;  %v824_v10 = vpop.xlane.xlu0 %823 }
 0x153   :  { %v2114_v16 = vrot.slane %v827_v19, %v3389_v41  ;;  %v2109_v62 = vrot.slane %v824_v10, %v3395_v43  ;;  %v936_v10 = vsel %vm527_vm0, %v407_v59, -inf  ;;  %v894_v14 = vsel %vm527_vm0, %v393_v3, -inf  ;;  %v261_v59 = vld [vmem:[%s4951_s0 + $0x7b0] sm:$0xff] }
 0x155   :  { %v2110_v21 = vsel %vm1609_vm2, %v2109_v62, %v2105_v9  ;;  %985 = vmax.xlane.f32.xlu1 %v984_v12  ;;  %934 = vmax.xlane.f32.xlu0 %v933_v13  ;;  %v168_v9 = vld [vmem:[%s4951_s0 + $0x4c8] sm:$0xff]  ;;  %v213_v62 = vld [vmem:[%s4951_s0 + $0x630] sm:$0xff] }
 0x156   :  { %v833_v25 = vpop.xlane.xlu1 %832  ;;  %v2115_v27 = vsel %vm1616_vm3, %v2114_v16, %v2110_v21  ;;  %v830_v28 = vpop.xlane.xlu0 %829  ;;  %v424_v16 = vmax.f32 %v168_v9, 0.0  ;;  %v152_v9 = vld [vmem:[%s4951_s0 + $0x448] sm:$0xff] }
 0x157   :  { %v2124_v31 = vrot.slane %v833_v25, %v3403_v51  ;;  %v2119_v32 = vrot.slane %v830_v28, %v3406_v52  ;;  %v408_v15 = vmax.f32 %v152_v9, 0.0  ;;  %v153_v9 = vld [vmem:[%s4951_s0 + $0x450] sm:$0xff] }
 0x159   :  { %v2120_v35 = vsel %vm1623_vm4, %v2119_v32, %v2115_v27  ;;  %1078 = vmax.xlane.f32.xlu1 %v1077_v29  ;;  %1027 = vmax.xlane.f32.xlu0 %v1026_v30  ;;  %v469_v27 = vmax.f32 %v213_v62, 0.0  ;;  %v455_v32 = vmax.f32 %v199_v24, 0.0  ;;  %v183_v24 = vld [vmem:[%s4951_s0 + $0x540] sm:$0xff] }
 0x15a   :  { %v839_v39 = vpop.xlane.xlu1 %838  ;;  %v2125_v44 = vsel %vm1630_vm5, %v2124_v31, %v2120_v35  ;;  %v836_v45 = vpop.xlane.xlu0 %835  ;;  %v987_v31 = vsel %vm527_vm0, %v424_v16, -inf  ;;  %v244_v35 = vld [vmem:[%s4951_s0 + $0x728] sm:$0xff] }
 0x15b   :  { %v2134_v54 = vrot.slane %v839_v39, %v3422_v4  ;;  %v2129_v55 = vrot.slane %v836_v45, %v3433_v11  ;;  %v1080_v47 = vsel %vm527_vm0, %v455_v32, -inf  ;;  %v500_v50 = vmax.f32 %v244_v35, 0.0  ;;  %v231_v35 = vld [vmem:[%s4951_s0 + $0x6c0] sm:$0xff] }
 0x15c   :  { %v439_v32 = vmax.f32 %v183_v24, 0.0  ;;  %v184_v24 = vld [vmem:[%s4951_s0 + $0x548] sm:$0xff] }
 0x15d   :  { %v2130_v58 = vsel %vm1637_vm6, %v2129_v55, %v2125_v44  ;;  %1171 = vmax.xlane.f32.xlu1 %v1170_v36  ;;  %1120 = vmax.xlane.f32.xlu0 %v1119_v46  ;;  %v230_v36 = vld [vmem:[%s4951_s0 + $0x6b8] sm:$0xff]  ;;  %v1122_v44 = vsel %vm527_vm0, %v469_v27, -inf }
 0x15e   :  { %v845_v63 = vpop.xlane.xlu1 %844  ;;  %v2135_v0 = vsel %vm1644_vm7, %v2134_v54, %v2130_v58  ;;  %v842_v1 = vpop.xlane.xlu0 %841  ;;  %v486_v53 = vmax.f32 %v230_v36, 0.0  ;;  %v138_v58 = vld [vmem:[%s4951_s0 + $0x3d8] sm:$0xff] }
 0x15f   :  { %v2144_v6 = vrot.slane %v845_v63, %v3446_v22  ;;  %v2139_v38 = vrot.slane %v842_v1, %v3449_v23  ;;  %v394_v3 = vmax.f32 %v138_v58, 0.0  ;;  %v214_v36 = vld [vmem:[%s4951_s0 + $0x638] sm:$0xff]  ;;  %v245_v58 = vld [vmem:[%s4951_s0 + $0x730] sm:$0xff] }
 0x161   :  { %v2140_v19 = vsel %vm1651_vm8, %v2139_v38, %v2135_v0  ;;  %1264 = vmax.xlane.f32.xlu1 %v1263_v2  ;;  %1213 = vmax.xlane.f32.xlu0 %v1212_v37  ;;  %v1215_v2 = vsel %vm527_vm0, %v500_v50, -inf  ;;  %v1173_v37 = vsel %vm527_vm0, %v486_v53, -inf  ;;  %v487_v50 = vmax.f32 %v231_v35, 0.0 }
 0x162   :  { %v851_v12 = vpop.xlane.xlu1 %850  ;;  %v2145_v13 = vsel %vm1658_vm9, %v2144_v6, %v2140_v19  ;;  %v848_v56 = vpop.xlane.xlu0 %847  ;;  %v517_v6 = vmax.f32 %v261_v59, 0.0  ;;  %v470_v53 = vmax.f32 %v214_v36, 0.0  ;;  %v215_v36 = vld [vmem:[%s4951_s0 + $0x640] sm:$0xff] }
 0x163   :  { %v2154_v20 = vrot.slane %v851_v12, %v3470_v48  ;;  %v2149_v21 = vrot.slane %v848_v56, %v3473_v49 }
 0x164   :  { %v1266_v56 = vsel %vm527_vm0, %v517_v6, -inf }
 0x165   :  { %v2150_v25 = vsel %vm4962_vm10, %v2149_v21, %v2145_v13  ;;  %937 = vmax.xlane.f32.xlu1 %v936_v10  ;;  %895 = vmax.xlane.f32.xlu0 %v894_v14  ;;  %v897_v13 = vsel %vm527_vm0, %v394_v3, -inf  ;;  %v425_v14 = vmax.f32 %v169_v7, 0.0  ;;  %v200_v21 = vld [vmem:[%s4951_s0 + $0x5c8] sm:$0xff]  ;;  %v501_v3 = vmax.f32 %v245_v58, 0.0  ;;  %v246_v58 = vld [vmem:[%s4951_s0 + $0x738] sm:$0xff] }
 0x166   :  { %v857_v28 = vpop.xlane.xlu1 %856  ;;  %v2155_v29 = vsel %vm1672_vm11, %v2154_v20, %v2150_v25  ;;  %v854_v30 = vpop.xlane.xlu0 %853 }
 0x167   :  { %v2164_v33 = vrot.slane %v857_v28, %v3483_v60  ;;  %v2159_v34 = vrot.slane %v854_v30, %v3486_v61  ;;  %v990_v30 = vsel %vm527_vm0, %v425_v14, -inf }
 0x169   :  { %v2160_v39 = vsel %vm4961_vm12, %v2159_v34, %v2155_v29  ;;  %1030 = vmax.xlane.f32.xlu1 %v1029_v26  ;;  %988 = vmax.xlane.f32.xlu0 %v987_v31  ;;  %v939_v26 = vsel %vm527_vm0, %v408_v15, -inf  ;;  %v456_v31 = vmax.f32 %v200_v21, 0.0  ;;  %v1218_v15 = vsel %vm527_vm0, %v501_v3, -inf }
 0x16a   :  { %v869_v45 = vpop.xlane.xlu1 %868  ;;  %v866_v46 = vpop.xlane.xlu0 %865  ;;  %v4110_v54 = vsel %vm1686_vm13, %v2164_v33, %v2160_v39  ;;  %v502_v3 = vmax.f32 %v246_v58, 0.0 }
 0x16b   :  { %v2183_v55 = vrot.slane %v869_v45, %v3392_v42  ;;  %v2179_v57 = vrot.slane %v866_v46, %v3386_v40  ;;  %v1083_v46 = vsel %vm527_vm0, %v456_v31, -inf }
 0x16d   :  { %v2184_v63 = vsel %vm1602_vm1, %v2183_v55, %v2179_v57  ;;  %1123 = vmax.xlane.f32.xlu1 %v1122_v44  ;;  %1081 = vmax.xlane.f32.xlu0 %v1080_v47  ;;  %v1032_v47 = vsel %vm527_vm0, %v439_v32, -inf  ;;  %v262_v57 = vld [vmem:[%s4951_s0 + $0x7b8] sm:$0xff]  ;;  %v440_v32 = vmax.f32 %v184_v24, 0.0 }
 0x16e   :  { %v962_v0 = vpop.xlane.xlu1 %961  ;;  %v872_v1 = vpop.xlane.xlu0 %871 }
 0x16f   :  { %v2188_v38 = vrot.slane %v872_v1, %v3395_v43  ;;  %v2337_v16 = vrot.slane %v962_v0, %v3386_v40  ;;  %v1176_v1 = vsel %vm527_vm0, %v487_v50, -inf }
 0x171   :  { %v2189_v19 = vsel %vm1609_vm2, %v2188_v38, %v2184_v63  ;;  %1216 = vmax.xlane.f32.xlu1 %v1215_v2  ;;  %1174 = vmax.xlane.f32.xlu0 %v1173_v37  ;;  %v1125_v2 = vsel %vm527_vm0, %v470_v53, -inf  ;;  %v518_v37 = vmax.f32 %v262_v57, 0.0  ;;  %v471_v53 = vmax.f32 %v215_v36, 0.0 }
 0x172   :  { %v875_v10 = vpop.xlane.xlu1 %874  ;;  %v965_v12 = vpop.xlane.xlu0 %964 }
 0x173   :  { %v2193_v62 = vrot.slane %v875_v10, %v3389_v41  ;;  %v2341_v20 = vrot.slane %v965_v12, %v3392_v42  ;;  %v1269_v14 = vsel %vm527_vm0, %v518_v37, -inf }
 0x175   :  { %v2194_v25 = vsel %vm1616_vm3, %v2193_v62, %v2189_v19  ;;  %v2342_v27 = vsel %vm1602_vm1, %v2341_v20, %v2337_v16  ;;  %898 = vmax.xlane.f32.xlu1 %v897_v13  ;;  %1267 = vmax.xlane.f32.xlu0 %v1266_v56  ;;  %v139_v19 = vld [vmem:[%s4951_s0 + $0x3e0] sm:$0xff]  ;;  %v409_v16 = vmax.f32 %v153_v9, 0.0 }
 0x176   :  { %v917_v28 = vpop.xlane.xlu1 %916  ;;  %v914_v29 = vpop.xlane.xlu0 %913  ;;  %v395_v62 = vmax.f32 %v139_v19, 0.0  ;;  %v140_v19 = vld [vmem:[%s4951_s0 + $0x3e8] sm:$0xff] }
 0x177   :  { %v2262_v33 = vrot.slane %v917_v28, %v3392_v42  ;;  %v2258_v34 = vrot.slane %v914_v29, %v3386_v40 }
 0x178   :  { %v900_v31 = vsel %vm527_vm0, %v395_v62, -inf }
 0x179   :  { %v2263_v39 = vsel %vm1602_vm1, %v2262_v33, %v2258_v34  ;;  %991 = vmax.xlane.f32.xlu1 %v990_v30  ;;  %940 = vmax.xlane.f32.xlu0 %v939_v26  ;;  %v942_v26 = vsel %vm527_vm0, %v409_v16, -inf  ;;  %v1221_v16 = vsel %vm527_vm0, %v502_v3, -inf }
 0x17a   :  { %v1058_v44 = vpop.xlane.xlu1 %1057  ;;  %v968_v45 = vpop.xlane.xlu0 %967 }
 0x17b   :  { %v2346_v55 = vrot.slane %v968_v45, %v3395_v43  ;;  %v2495_v6 = vrot.slane %v1058_v44, %v3386_v40 }
 0x17d   :  { %v2347_v59 = vsel %vm1609_vm2, %v2346_v55, %v2342_v27  ;;  %1084 = vmax.xlane.f32.xlu1 %v1083_v46  ;;  %1033 = vmax.xlane.f32.xlu0 %v1032_v47  ;;  %v1035_v47 = vsel %vm527_vm0, %v440_v32, -inf }
 0x17e   :  { %v878_v63 = vpop.xlane.xlu1 %877  ;;  %v1061_v0 = vpop.xlane.xlu0 %1060 }
 0x17f   :  { %v2198_v38 = vrot.slane %v878_v63, %v3406_v52  ;;  %v2499_v7 = vrot.slane %v1061_v0, %v3392_v42 }
 0x181   :  { %v2199_v10 = vsel %vm1623_vm4, %v2198_v38, %v2194_v25  ;;  %v2500_v12 = vsel %vm1602_vm1, %v2499_v7, %v2495_v6  ;;  %1177 = vmax.xlane.f32.xlu1 %v1176_v1  ;;  %1126 = vmax.xlane.f32.xlu0 %v1125_v2  ;;  %v170_v25 = vld [vmem:[%s4951_s0 + $0x4d8] sm:$0xff]  ;;  %v1128_v2 = vsel %vm527_vm0, %v471_v53, -inf }
 0x182   :  { %v971_v13 = vpop.xlane.xlu1 %970  ;;  %v920_v56 = vpop.xlane.xlu0 %919  ;;  %v426_v33 = vmax.f32 %v170_v25, 0.0 }
 0x183   :  { %v2351_v20 = vrot.slane %v971_v13, %v3389_v41  ;;  %v2267_v21 = vrot.slane %v920_v56, %v3395_v43 }
 0x184   :  { %v993_v50 = vsel %vm527_vm0, %v426_v33, -inf }
 0x185   :  { %v2352_v27 = vsel %vm1616_vm3, %v2351_v20, %v2347_v59  ;;  %v2268_v28 = vsel %vm1609_vm2, %v2267_v21, %v2263_v39  ;;  %1270 = vmax.xlane.f32.xlu1 %v1269_v14  ;;  %1219 = vmax.xlane.f32.xlu0 %v1218_v15  ;;  %v201_v39 = vld [vmem:[%s4951_s0 + $0x5d0] sm:$0xff]  ;;  %v232_v59 = vld [vmem:[%s4951_s0 + $0x6c8] sm:$0xff]  ;;  %v396_v20 = vmax.f32 %v140_v19, 0.0 }
 0x186   :  { %v1013_v29 = vpop.xlane.xlu1 %1012  ;;  %v1010_v30 = vpop.xlane.xlu0 %1009  ;;  %v457_v55 = vmax.f32 %v201_v39, 0.0  ;;  %v488_v6 = vmax.f32 %v232_v59, 0.0 }
 0x187   :  { %v2420_v34 = vrot.slane %v1013_v29, %v3392_v42  ;;  %v2416_v35 = vrot.slane %v1010_v30, %v3386_v40  ;;  %v154_v29 = vld [vmem:[%s4951_s0 + $0x458] sm:$0xff]  ;;  %v903_v33 = vsel %vm527_vm0, %v396_v20, -inf }
 0x188   :  { %v1086_v37 = vsel %vm527_vm0, %v457_v55, -inf  ;;  %v1179_v62 = vsel %vm527_vm0, %v488_v6, -inf  ;;  %v410_v36 = vmax.f32 %v154_v29, 0.0 }
 0x189   :  { %v2421_v44 = vsel %vm1602_vm1, %v2420_v34, %v2416_v35  ;;  %943 = vmax.xlane.f32.xlu1 %v942_v26  ;;  %901 = vmax.xlane.f32.xlu0 %v900_v31 }
 0x18a   :  { %v1154_v45 = vpop.xlane.xlu1 %1153  ;;  %v1064_v46 = vpop.xlane.xlu0 %1063 }
 0x18b   :  { %v2504_v57 = vrot.slane %v1064_v46, %v3395_v43  ;;  %v2653_v38 = vrot.slane %v1154_v45, %v3386_v40 }
 0x18d   :  { %v2505_v63 = vsel %vm1609_vm2, %v2504_v57, %v2500_v12  ;;  %1036 = vmax.xlane.f32.xlu1 %v1035_v47  ;;  %994 = vmax.xlane.f32.xlu0 %v993_v50  ;;  %v263_v12 = vld [vmem:[%s4951_s0 + $0x7c0] sm:$0xff]  ;;  %v945_v57 = vsel %vm527_vm0, %v410_v36, -inf }
 0x18e   :  { %v881_v0 = vpop.xlane.xlu1 %880  ;;  %v1157_v1 = vpop.xlane.xlu0 %1156  ;;  %v519_v21 = vmax.f32 %v263_v12, 0.0  ;;  %v264_v12 = vld [vmem:[%s4951_s0 + $0x7c8] sm:$0xff] }
 0x18f   :  { %v2203_v7 = vrot.slane %v881_v0, %v3403_v51  ;;  %v2657_v9 = vrot.slane %v1157_v1, %v3392_v42 }
 0x190   :  { %v1272_v34 = vsel %vm527_vm0, %v519_v21, -inf }
 0x191   :  { %v4223_v13 = vsel %vm1630_vm5, %v2203_v7, %v2199_v10  ;;  %v2658_v56 = vsel %vm1602_vm1, %v2657_v9, %v2653_v38  ;;  %1129 = vmax.xlane.f32.xlu1 %v1128_v2  ;;  %1087 = vmax.xlane.f32.xlu0 %v1086_v37  ;;  %v171_v10 = vld [vmem:[%s4951_s0 + $0x4e0] sm:$0xff] }
 0x192   :  { %v974_v14 = vpop.xlane.xlu1 %973  ;;  %v923_v15 = vpop.xlane.xlu0 %922  ;;  %v427_v35 = vmax.f32 %v171_v10, 0.0 }
 0x193   :  { %v2356_v24 = vrot.slane %v974_v14, %v3406_v52  ;;  %v2272_v25 = vrot.slane %v923_v15, %v3389_v41  ;;  %v247_v14 = vld [vmem:[%s4951_s0 + $0x740] sm:$0xff] }
 0x194   :  { %v996_v55 = vsel %vm527_vm0, %v427_v35, -inf }
 0x195   :  { %v4237_v30 = vsel %vm1623_vm4, %v2356_v24, %v2352_v27  ;;  %v4240_v26 = vsel %vm1616_vm3, %v2272_v25, %v2268_v28  ;;  %1222 = vmax.xlane.f32.xlu1 %v1221_v16  ;;  %1180 = vmax.xlane.f32.xlu0 %v1179_v62  ;;  %v202_v27 = vld [vmem:[%s4951_s0 + $0x5d8] sm:$0xff]  ;;  %v185_v28 = vld [vmem:[%s4951_s0 + $0x550] sm:$0xff]  ;;  %v520_v24 = vmax.f32 %v264_v12, 0.0  ;;  %v503_v25 = vmax.f32 %v247_v14, 0.0 }
 0x196   :  { %v1067_v31 = vpop.xlane.xlu1 %1066  ;;  %v1016_v32 = vpop.xlane.xlu0 %1015  ;;  %v458_v58 = vmax.f32 %v202_v27, 0.0  ;;  %v441_v59 = vmax.f32 %v185_v28, 0.0 }
 0x197   :  { %v2509_v39 = vrot.slane %v1067_v31, %v3389_v41  ;;  %v2425_v45 = vrot.slane %v1016_v32, %v3395_v43  ;;  %v141_v32 = vld [vmem:[%s4951_s0 + $0x3f0] sm:$0xff] }
 0x198   :  { %v1089_v6 = vsel %vm527_vm0, %v458_v58, -inf  ;;  %v1038_v38 = vsel %vm527_vm0, %v441_v59, -inf  ;;  %v397_v28 = vmax.f32 %v141_v32, 0.0 }
 0x199   :  { %v4253_v46 = vsel %vm1616_vm3, %v2509_v39, %v2505_v63  ;;  %v4256_v47 = vsel %vm1609_vm2, %v2425_v45, %v2421_v44  ;;  %904 = vmax.xlane.f32.xlu1 %v903_v33  ;;  %1273 = vmax.xlane.f32.xlu0 %v1272_v34  ;;  %v233_v63 = vld [vmem:[%s4951_s0 + $0x6d0] sm:$0xff]  ;;  %v216_v44 = vld [vmem:[%s4951_s0 + $0x648] sm:$0xff]  ;;  %v1275_v39 = vsel %vm527_vm0, %v520_v24, -inf  ;;  %v1224_v45 = vsel %vm527_vm0, %v503_v25, -inf }
 0x19a   :  { %v1109_v50 = vpop.xlane.xlu1 %1108  ;;  %v1106_v53 = vpop.xlane.xlu0 %1105  ;;  %v489_v7 = vmax.f32 %v233_v63, 0.0  ;;  %v472_v9 = vmax.f32 %v216_v44, 0.0  ;;  %v906_v63 = vsel %vm527_vm0, %v397_v28, -inf }
 0x19b   :  { %v2578_v0 = vrot.slane %v1109_v50, %v3392_v42  ;;  %v2574_v1 = vrot.slane %v1106_v53, %v3386_v40 }
 0x19c   :  { %v1182_v20 = vsel %vm527_vm0, %v489_v7, -inf  ;;  %v1131_v21 = vsel %vm527_vm0, %v472_v9, -inf }
 0x19d   :  { %v4269_v2 = vsel %vm1602_vm1, %v2578_v0, %v2574_v1  ;;  %997 = vmax.xlane.f32.xlu1 %v996_v55  ;;  %946 = vmax.xlane.f32.xlu0 %v945_v57  ;;  %v172_v55 = vld [vmem:[%s4951_s0 + $0x4e8] sm:$0xff] }
 0x19e   :  { %v1250_v37 = vpop.xlane.xlu1 %1249  ;;  %v1160_v3 = vpop.xlane.xlu0 %1159 }
 0x19f   :  { %v2662_v19 = vrot.slane %v1160_v3, %v3395_v43  ;;  %v2811_v10 = vrot.slane %v1250_v37, %v3386_v40  ;;  %v428_v37 = vmax.f32 %v172_v55, 0.0 }
 0x1a1   :  { %v2663_v15 = vsel %vm1609_vm2, %v2662_v19, %v2658_v56  ;;  %1090 = vmax.xlane.f32.xlu1 %v1089_v6  ;;  %1039 = vmax.xlane.f32.xlu0 %v1038_v38  ;;  %v155_v56 = vld [vmem:[%s4951_s0 + $0x460] sm:$0xff]  ;;  %v999_v14 = vsel %vm527_vm0, %v428_v37, -inf }
 0x1a2   :  { %v884_v16 = vpop.xlane.xlu1 %883  ;;  %v1253_v62 = vpop.xlane.xlu0 %1252  ;;  %v411_v27 = vmax.f32 %v155_v56, 0.0 }
 0x1a3   :  { %v2208_v29 = vrot.slane %v884_v16, %v3433_v11  ;;  %v2815_v31 = vrot.slane %v1253_v62, %v3392_v42 }
 0x1a4   :  { %v948_v1 = vsel %vm527_vm0, %v411_v27, -inf }
 0x1a5   :  { %v4294_v33 = vsel %vm1637_vm6, %v2208_v29, %v4223_v13  ;;  %v4297_v34 = vsel %vm1602_vm1, %v2815_v31, %v2811_v10  ;;  %1183 = vmax.xlane.f32.xlu1 %v1182_v20  ;;  %1132 = vmax.xlane.f32.xlu0 %v1131_v21  ;;  %v186_v13 = vld [vmem:[%s4951_s0 + $0x558] sm:$0xff] }
 0x1a6   :  { %v977_v35 = vpop.xlane.xlu1 %976  ;;  %v926_v36 = vpop.xlane.xlu0 %925  ;;  %v442_v44 = vmax.f32 %v186_v13, 0.0 }
 0x1a7   :  { %v2361_v50 = vrot.slane %v977_v35, %v3403_v51  ;;  %v2277_v53 = vrot.slane %v926_v36, %v3406_v52 }
 0x1a8   :  { %v1041_v12 = vsel %vm527_vm0, %v442_v44, -inf }
 0x1a9   :  { %v4311_v57 = vsel %vm1630_vm5, %v2361_v50, %v4237_v30  ;;  %v4315_v58 = vsel %vm1623_vm4, %v2277_v53, %v4240_v26  ;;  %1276 = vmax.xlane.f32.xlu1 %v1275_v39  ;;  %1225 = vmax.xlane.f32.xlu0 %v1224_v45  ;;  %v217_v30 = vld [vmem:[%s4951_s0 + $0x650] sm:$0xff]  ;;  %v203_v26 = vld [vmem:[%s4951_s0 + $0x5e0] sm:$0xff] }
 0x1aa   :  { %v1070_v59 = vpop.xlane.xlu1 %1069  ;;  %v1019_v0 = vpop.xlane.xlu0 %1018  ;;  %v473_v16 = vmax.f32 %v217_v30, 0.0  ;;  %v459_v62 = vmax.f32 %v203_v26, 0.0 }
 0x1ab   :  { %v2514_v3 = vrot.slane %v1070_v59, %v3406_v52  ;;  %v2430_v6 = vrot.slane %v1019_v0, %v3389_v41  ;;  %v156_v59 = vld [vmem:[%s4951_s0 + $0x468] sm:$0xff]  ;;  %v142_v0 = vld [vmem:[%s4951_s0 + $0x3f8] sm:$0xff] }
 0x1ac   :  { %v1134_v31 = vsel %vm527_vm0, %v473_v16, -inf  ;;  %v1092_v56 = vsel %vm527_vm0, %v459_v62, -inf  ;;  %v412_v30 = vmax.f32 %v156_v59, 0.0  ;;  %v398_v26 = vmax.f32 %v142_v0, 0.0 }
 0x1ad   :  { %v4329_v38 = vsel %vm1623_vm4, %v2514_v3, %v4253_v46  ;;  %v4333_v7 = vsel %vm1616_vm3, %v2430_v6, %v4256_v47  ;;  %949 = vmax.xlane.f32.xlu1 %v948_v1  ;;  %907 = vmax.xlane.f32.xlu0 %v906_v63  ;;  %v248_v46 = vld [vmem:[%s4951_s0 + $0x748] sm:$0xff]  ;;  %v234_v47 = vld [vmem:[%s4951_s0 + $0x6d8] sm:$0xff] }
 0x1ae   :  { %v1163_v9 = vpop.xlane.xlu1 %1162  ;;  %v1112_v19 = vpop.xlane.xlu0 %1111  ;;  %v504_v32 = vmax.f32 %v248_v46, 0.0  ;;  %v490_v35 = vmax.f32 %v234_v47, 0.0 }
 0x1af   :  { %v2667_v20 = vrot.slane %v1163_v9, %v3389_v41  ;;  %v2583_v21 = vrot.slane %v1112_v19, %v3395_v43 }
 0x1b0   :  { %v1227_v50 = vsel %vm527_vm0, %v504_v32, -inf }
 0x1b1   :  { %v4346_v24 = vsel %vm1616_vm3, %v2667_v20, %v2663_v15  ;;  %v4350_v25 = vsel %vm1609_vm2, %v2583_v21, %v4269_v2  ;;  %1042 = vmax.xlane.f32.xlu1 %v1041_v12  ;;  %1000 = vmax.xlane.f32.xlu0 %v999_v14  ;;  %v125_v15 = vld [vmem:[%s4951_s0 + $0x370] sm:$0xff]  ;;  %v951_v20 = vsel %vm527_vm0, %v412_v30, -inf  ;;  %v909_v21 = vsel %vm527_vm0, %v398_v26, -inf }
 0x1b2   :  { %v1205_v10 = vpop.xlane.xlu1 %1204  ;;  %v1202_v29 = vpop.xlane.xlu0 %1201  ;;  %v265_v2 = vld [vmem:[%s4951_s0 + $0x7d0] sm:$0xff] }
 0x1b3   :  { %v2736_v36 = vrot.slane %v1205_v10, %v3392_v42  ;;  %v2732_v39 = vrot.slane %v1202_v29, %v3386_v40  ;;  %v1185_v42 = vsel %vm527_vm0, %v490_v35, -inf  ;;  %v381_v40 = vmax.f32 %v125_v15, 0.0 }
 0x1b4   :  { %v521_v53 = vmax.f32 %v265_v2, 0.0 }
 0x1b5   :  { %v4363_v45 = vsel %vm1602_vm1, %v2736_v36, %v2732_v39  ;;  %1135 = vmax.xlane.f32.xlu1 %v1134_v31  ;;  %1093 = vmax.xlane.f32.xlu0 %v1092_v56  ;;  %v858_v3 = vsel %vm527_vm0, %v381_v40, -inf  ;;  %vm4963_vm1 = vmmov %vm4962_vm10 }
 0x1b6   :  { %v887_v27 = vpop.xlane.xlu1 %886  ;;  %v1256_v28 = vpop.xlane.xlu0 %1255  ;;  %v1278_v6 = vsel %vm527_vm0, %v521_v53, -inf }
 0x1b7   :  { %v2213_v13 = vrot.slane %v887_v27, %v3422_v4  ;;  %v2820_v55 = vrot.slane %v1256_v28, %v3395_v43 }
 0x1b9   :  { %v4377_v1 = vsel %vm1644_vm7, %v2213_v13, %v4294_v33  ;;  %v2821_v63 = vsel %vm1609_vm2, %v2820_v55, %v4297_v34  ;;  %1228 = vmax.xlane.f32.xlu1 %v1227_v50  ;;  %1186 = vmax.xlane.f32.xlu0 %v1185_v42  ;;  %v187_v33 = vld [vmem:[%s4951_s0 + $0x560] sm:$0xff]  ;;  %v173_v34 = vld [vmem:[%s4951_s0 + $0x4f0] sm:$0xff] }
 0x1ba   :  { %v980_v44 = vpop.xlane.xlu1 %979  ;;  %v929_v37 = vpop.xlane.xlu0 %928  ;;  %v443_v46 = vmax.f32 %v187_v33, 0.0  ;;  %v429_v47 = vmax.f32 %v173_v34, 0.0 }
 0x1bb   :  { %v2366_v9 = vrot.slane %v980_v44, %v3433_v11  ;;  %v2282_v19 = vrot.slane %v929_v37, %v3403_v51 }
 0x1bc   :  { %v1044_v36 = vsel %vm527_vm0, %v443_v46, -inf  ;;  %v1002_v39 = vsel %vm527_vm0, %v429_v47, -inf }
 0x1bd   :  { %v4393_v12 = vsel %vm1637_vm6, %v2366_v9, %v4311_v57  ;;  %v2283_v14 = vsel %vm1630_vm5, %v2282_v19, %v4315_v58  ;;  %859 = vmax.xlane.f32.xlu1 %v858_v3  ;;  %1279 = vmax.xlane.f32.xlu0 %v1278_v6  ;;  %v218_v57 = vld [vmem:[%s4951_s0 + $0x658] sm:$0xff]  ;;  %v204_v58 = vld [vmem:[%s4951_s0 + $0x5e8] sm:$0xff] }
 0x1be   :  { %v1073_v16 = vpop.xlane.xlu1 %1072  ;;  %v1022_v62 = vpop.xlane.xlu0 %1021  ;;  %v474_v15 = vmax.f32 %v218_v57, 0.0  ;;  %v460_v2 = vmax.f32 %v204_v58, 0.0 }
 0x1bf   :  { %v2519_v10 = vrot.slane %v1073_v16, %v3403_v51  ;;  %v2435_v29 = vrot.slane %v1022_v62, %v3406_v52 }
 0x1c0   :  { %v1137_v13 = vsel %vm527_vm0, %v474_v15, -inf  ;;  %v1095_v55 = vsel %vm527_vm0, %v460_v2, -inf }
 0x1c1   :  { %v4409_v31 = vsel %vm1630_vm5, %v2519_v10, %v4329_v38  ;;  %v2436_v56 = vsel %vm1623_vm4, %v2435_v29, %v4333_v7  ;;  %952 = vmax.xlane.f32.xlu1 %v951_v20  ;;  %910 = vmax.xlane.f32.xlu0 %v909_v21  ;;  %v249_v38 = vld [vmem:[%s4951_s0 + $0x750] sm:$0xff]  ;;  %v235_v7 = vld [vmem:[%s4951_s0 + $0x6e0] sm:$0xff] }
 0x1c2   :  { %v1166_v32 = vpop.xlane.xlu1 %1165  ;;  %v1115_v35 = vpop.xlane.xlu0 %1114  ;;  %v505_v59 = vmax.f32 %v249_v38, 0.0  ;;  %v491_v0 = vmax.f32 %v235_v7, 0.0 }
 0x1c3   :  { %v2672_v27 = vrot.slane %v1166_v32, %v3406_v52  ;;  %v2588_v28 = vrot.slane %v1115_v35, %v3389_v41 }
 0x1c4   :  { %v1188_v9 = vsel %vm527_vm0, %v491_v0, -inf }
 0x1c5   :  { %v4425_v50 = vsel %vm1623_vm4, %v2672_v27, %v4346_v24  ;;  %v2589_v42 = vsel %vm1616_vm3, %v2588_v28, %v4350_v25  ;;  %1045 = vmax.xlane.f32.xlu1 %v1044_v36  ;;  %1003 = vmax.xlane.f32.xlu0 %v1002_v39  ;;  %v126_v24 = vld [vmem:[%s4951_s0 + $0x378] sm:$0xff] }
 0x1c6   :  { %v1259_v40 = vpop.xlane.xlu1 %1258  ;;  %v1208_v53 = vpop.xlane.xlu0 %1207  ;;  %v266_v25 = vld [vmem:[%s4951_s0 + $0x7d8] sm:$0xff]  ;;  %v382_v19 = vmax.f32 %v126_v24, 0.0 }
 0x1c7   :  { %v2825_v44 = vrot.slane %v1259_v40, %v3389_v41  ;;  %v2741_v37 = vrot.slane %v1208_v53, %v3395_v43  ;;  %v1230_v43 = vsel %vm527_vm0, %v505_v59, -inf  ;;  %v522_v33 = vmax.f32 %v266_v25, 0.0 }
 0x1c8   :  { %v861_v47 = vsel %vm527_vm0, %v382_v19, -inf }
 0x1c9   :  { %v4440_v3 = vsel %vm1616_vm3, %v2825_v44, %v2821_v63  ;;  %v2742_v6 = vsel %vm1609_vm2, %v2741_v37, %v4363_v45  ;;  %1138 = vmax.xlane.f32.xlu1 %v1137_v13  ;;  %1096 = vmax.xlane.f32.xlu0 %v1095_v55  ;;  %v174_v63 = vld [vmem:[%s4951_s0 + $0x4f8] sm:$0xff]  ;;  %v157_v45 = vld [vmem:[%s4951_s0 + $0x470] sm:$0xff]  ;;  %v1281_v10 = vsel %vm527_vm0, %v522_v33, -inf }
 0x1ca   :  { %v932_v30 = vpop.xlane.xlu1 %931  ;;  %v890_v26 = vpop.xlane.xlu0 %889  ;;  %v430_v29 = vmax.f32 %v174_v63, 0.0  ;;  %v413_v57 = vmax.f32 %v157_v45, 0.0 }
 0x1cb   :  { %v2287_v34 = vrot.slane %v932_v30, %v3433_v11  ;;  %v2218_v16 = vrot.slane %v890_v26, %v3449_v23 }
 0x1cc   :  { %v1005_v2 = vsel %vm527_vm0, %v430_v29, -inf  ;;  %v954_v27 = vsel %vm527_vm0, %v413_v57, -inf }
 0x1cd   :  { %v4455_v62 = vsel %vm1637_vm6, %v2287_v34, %v2283_v14  ;;  %v2219_v20 = vsel %vm1651_vm8, %v2218_v16, %v4377_v1  ;;  %1231 = vmax.xlane.f32.xlu1 %v1230_v43  ;;  %1189 = vmax.xlane.f32.xlu0 %v1188_v9  ;;  %v205_v14 = vld [vmem:[%s4951_s0 + $0x5f0] sm:$0xff]  ;;  %v188_v1 = vld [vmem:[%s4951_s0 + $0x568] sm:$0xff] }
 0x1ce   :  { %v1025_v21 = vpop.xlane.xlu1 %1024  ;;  %v983_v46 = vpop.xlane.xlu0 %982  ;;  %v461_v28 = vmax.f32 %v205_v14, 0.0  ;;  %v444_v38 = vmax.f32 %v188_v1, 0.0 }
 0x1cf   :  { %v2440_v58 = vrot.slane %v1025_v21, %v3403_v51  ;;  %v2371_v32 = vrot.slane %v983_v46, %v3422_v4 }
 0x1d0   :  { %v1098_v0 = vsel %vm527_vm0, %v461_v28, -inf  ;;  %v1047_v44 = vsel %vm527_vm0, %v444_v38, -inf }
 0x1d1   :  { %v4470_v35 = vsel %vm1630_vm5, %v2440_v58, %v2436_v56  ;;  %v2372_v36 = vsel %vm1644_vm7, %v2371_v32, %v4393_v12  ;;  %862 = vmax.xlane.f32.xlu1 %v861_v47  ;;  %1282 = vmax.xlane.f32.xlu0 %v1281_v10  ;;  %v236_v56 = vld [vmem:[%s4951_s0 + $0x6e8] sm:$0xff]  ;;  %v219_v12 = vld [vmem:[%s4951_s0 + $0x660] sm:$0xff] }
 0x1d2   :  { %v1118_v39 = vpop.xlane.xlu1 %1117  ;;  %v1076_v15 = vpop.xlane.xlu0 %1075  ;;  %v492_v37 = vmax.f32 %v236_v56, 0.0  ;;  %v475_v24 = vmax.f32 %v219_v12, 0.0 }
 0x1d3   :  { %v2593_v7 = vrot.slane %v1118_v39, %v3406_v52  ;;  %v2524_v40 = vrot.slane %v1076_v15, %v3433_v11 }
 0x1d4   :  { %v1191_v19 = vsel %vm527_vm0, %v492_v37, -inf  ;;  %v1140_v33 = vsel %vm527_vm0, %v475_v24, -inf }
 0x1d5   :  { %v4485_v53 = vsel %vm1623_vm4, %v2593_v7, %v2589_v42  ;;  %v2525_v13 = vsel %vm1637_vm6, %v2524_v40, %v4409_v31  ;;  %1006 = vmax.xlane.f32.xlu1 %v1005_v2  ;;  %955 = vmax.xlane.f32.xlu0 %v954_v27  ;;  %v267_v42 = vld [vmem:[%s4951_s0 + $0x7e0] sm:$0xff]  ;;  %v250_v31 = vld [vmem:[%s4951_s0 + $0x758] sm:$0xff] }
 0x1d6   :  { %v1211_v55 = vpop.xlane.xlu1 %1210  ;;  %v1169_v59 = vpop.xlane.xlu0 %1168  ;;  %v523_v34 = vmax.f32 %v267_v42, 0.0  ;;  %v506_v16 = vmax.f32 %v250_v31, 0.0 }
 0x1d7   :  { %v2746_v25 = vrot.slane %v1211_v55, %v3389_v41  ;;  %v2677_v30 = vrot.slane %v1169_v59, %v3403_v51 }
 0x1d8   :  { %v1284_v29 = vsel %vm527_vm0, %v523_v34, -inf  ;;  %v1233_v57 = vsel %vm527_vm0, %v506_v16, -inf }
 0x1d9   :  { %v4500_v26 = vsel %vm1616_vm3, %v2746_v25, %v2742_v6  ;;  %v2678_v43 = vsel %vm1630_vm5, %v2677_v30, %v4425_v50  ;;  %1099 = vmax.xlane.f32.xlu1 %v1098_v0  ;;  %1048 = vmax.xlane.f32.xlu0 %v1047_v44  ;;  %v189_v6 = vld [vmem:[%s4951_s0 + $0x570] sm:$0xff]  ;;  %v158_v50 = vld [vmem:[%s4951_s0 + $0x478] sm:$0xff]  ;;  %vm4966_vm3 = vmmov %vm4961_vm12 }
 0x1da   :  { %v893_v9 = vpop.xlane.xlu1 %892  ;;  %v1262_v41 = vpop.xlane.xlu0 %1261  ;;  %v445_v58 = vmax.f32 %v189_v6, 0.0  ;;  %v414_v32 = vmax.f32 %v158_v50, 0.0  ;;  %vm4971_vm10 = vmmov %vm4966_vm3 }
 0x1db   :  { %v2223_v63 = vrot.slane %v893_v9, %v3446_v22  ;;  %v2830_v45 = vrot.slane %v1262_v41, %v3406_v52  ;;  %vm4973_vm12 = vmmov %vm4966_vm3 }
 0x1dc   :  { %v1050_v28 = vsel %vm527_vm0, %v445_v58, -inf  ;;  %v957_v38 = vsel %vm527_vm0, %v414_v32, -inf }
 0x1dd   :  { %v4515_v21 = vsel %vm1658_vm9, %v2223_v63, %v2219_v20  ;;  %v2831_v46 = vsel %vm1623_vm4, %v2830_v45, %v4440_v3  ;;  %1192 = vmax.xlane.f32.xlu1 %v1191_v19  ;;  %1141 = vmax.xlane.f32.xlu0 %v1140_v33  ;;  %v220_v20 = vld [vmem:[%s4951_s0 + $0x668] sm:$0xff]  ;;  %v206_v3 = vld [vmem:[%s4951_s0 + $0x5f8] sm:$0xff] }
 0x1de   :  { %v986_v47 = vpop.xlane.xlu1 %985  ;;  %v935_v10 = vpop.xlane.xlu0 %934  ;;  %v476_v7 = vmax.f32 %v220_v20, 0.0  ;;  %v462_v40 = vmax.f32 %v206_v3, 0.0  ;;  %v1327_v3 = vld [vmem:[%s4952_s1 + $0xf8] sm:$0xff] }
 0x1df   :  { %v2376_v14 = vrot.slane %v986_v47, %v3449_v23  ;;  %v2292_v1 = vrot.slane %v935_v10, %v3422_v4  ;;  %2996 = vmatprep.subr.mxu0 %v1327_v3 }
 0x1e0   :  { %v1143_v37 = vsel %vm527_vm0, %v476_v7, -inf  ;;  %v1101_v24 = vsel %vm527_vm0, %v462_v40, -inf }
 0x1e1   :  { %v4530_v39 = vsel %vm1651_vm8, %v2376_v14, %v2372_v36  ;;  %v2293_v15 = vsel %vm1644_vm7, %v2292_v1, %v4455_v62  ;;  %1285 = vmax.xlane.f32.xlu1 %v1284_v29  ;;  %1234 = vmax.xlane.f32.xlu0 %v1233_v57  ;;  %v251_v36 = vld [vmem:[%s4951_s0 + $0x760] sm:$0xff]  ;;  %v237_v62 = vld [vmem:[%s4951_s0 + $0x6f0] sm:$0xff] }
 0x1e2   :  { %v1079_v2 = vpop.xlane.xlu1 %1078  ;;  %v1028_v27 = vpop.xlane.xlu0 %1027  ;;  %v507_v25 = vmax.f32 %v251_v36, 0.0  ;;  %v493_v30 = vmax.f32 %v237_v62, 0.0 }
 0x1e3   :  { %v2529_v56 = vrot.slane %v1079_v2, %v3422_v4  ;;  %v2445_v12 = vrot.slane %v1028_v27, %v3433_v11  ;;  %v1311_v2 = vld [vmem:[%s4952_s1 + $0x78] sm:$0xff] }
 0x1e4   :  { %v1236_v34 = vsel %vm527_vm0, %v507_v25, -inf  ;;  %v1194_v16 = vsel %vm527_vm0, %v493_v30, -inf  ;;  %2997 = vmatpush3.msra.mxu0 %v1311_v2  ;;  %v1309_v25 = vld [vmem:[%s4952_s1 + $0x68] sm:$0xff] }
 0x1e5   :  { %v4545_v55 = vsel %vm1644_vm7, %v2529_v56, %v2525_v13  ;;  %v4549_v59 = vsel %vm1637_vm6, %v2445_v12, %v4470_v35  ;;  %1051 = vmax.xlane.f32.xlu1 %v1050_v28  ;;  %958 = vmax.xlane.f32.xlu0 %v957_v38  ;;  %v190_v13 = vld [vmem:[%s4951_s0 + $0x578] sm:$0xff]  ;;  %v268_v35 = vld [vmem:[%s4951_s0 + $0x7e8] sm:$0xff]  ;;  %v1326_v38 = vld [vmem:[%s4952_s1 + $0xf0] sm:$0xff] }
 0x1e6   :  { %v1172_v0 = vpop.xlane.xlu1 %1171  ;;  %v1121_v44 = vpop.xlane.xlu0 %1120  ;;  %v446_v63 = vmax.f32 %v190_v13, 0.0  ;;  %v524_v45 = vmax.f32 %v268_v35, 0.0  ;;  %2998 = vmatprep.subr.mxu0 %v1326_v38 }
 0x1e7   :  { %v2682_v42 = vrot.slane %v1172_v0, %v3433_v11  ;;  %v2598_v31 = vrot.slane %v1121_v44, %v3403_v51  ;;  %v253_v44 = vld [vmem:[%s4951_s0 + $0x770] sm:$0xff] }
 0x1e8   :  { %v1287_v58 = vsel %vm527_vm0, %v524_v45, -inf  ;;  %v270_v45 = vld [vmem:[%s4951_s0 + $0x7f8] sm:$0xff] }
 0x1e9   :  { %v4562_v9 = vsel %vm1637_vm6, %v2682_v42, %v2678_v43  ;;  %v4566_v41 = vsel %vm1630_vm5, %v2598_v31, %v4485_v53  ;;  %1144 = vmax.xlane.f32.xlu1 %v1143_v37  ;;  %1102 = vmax.xlane.f32.xlu0 %v1101_v24  ;;  %v238_v43 = vld [vmem:[%s4951_s0 + $0x6f8] sm:$0xff]  ;;  %v221_v53 = vld [vmem:[%s4951_s0 + $0x670] sm:$0xff]  ;;  %v1325_v24 = vld [vmem:[%s4952_s1 + $0xe8] sm:$0xff] }
 0x1ea   :  { %v1265_v19 = vpop.xlane.xlu1 %1264  ;;  %v1214_v33 = vpop.xlane.xlu0 %1213  ;;  %v494_v32 = vmax.f32 %v238_v43, 0.0  ;;  %v477_v14 = vmax.f32 %v221_v53, 0.0  ;;  %v222_v37 = vld [vmem:[%s4951_s0 + $0x678] sm:$0xff]  ;;  %v1324_v31 = vld [vmem:[%s4952_s1 + $0xe0] sm:$0xff] }
 0x1eb   :  { %v2835_v6 = vrot.slane %v1265_v19, %v3403_v51  ;;  %v2751_v50 = vrot.slane %v1214_v33, %v3406_v52  ;;  %v1053_v52 = vsel %vm527_vm0, %v446_v63, -inf  ;;  %v254_v63 = vld [vmem:[%s4951_s0 + $0x778] sm:$0xff] }
 0x1ec   :  { %v1197_v56 = vsel %vm527_vm0, %v494_v32, -inf  ;;  %v1146_v12 = vsel %vm527_vm0, %v477_v14, -inf  ;;  %v510_v14 = vmax.f32 %v254_v63, 0.0  ;;  %v1300_v63 = vld [vmem:[%s4952_s1 + $0x20] sm:$0xff] }
 0x1ed   :  { %v4579_v47 = vsel %vm1630_vm5, %v2835_v6, %v2831_v46  ;;  %v4583_v10 = vsel %vm1623_vm4, %v2751_v50, %v4500_v26  ;;  %1237 = vmax.xlane.f32.xlu1 %v1236_v34  ;;  %1195 = vmax.xlane.f32.xlu0 %v1194_v16  ;;  %v269_v46 = vld [vmem:[%s4951_s0 + $0x7f0] sm:$0xff]  ;;  %v252_v26 = vld [vmem:[%s4951_s0 + $0x768] sm:$0xff]  ;;  %v509_v34 = vmax.f32 %v253_v44, 0.0  ;;  %v478_v16 = vmax.f32 %v222_v37, 0.0  ;;  %v1308_v6 = vld [vmem:[%s4952_s1 + $0x60] sm:$0xff] }
 0x1ee   :  { %v938_v29 = vpop.xlane.xlu1 %937  ;;  %v896_v57 = vpop.xlane.xlu0 %895  ;;  %v525_v36 = vmax.f32 %v269_v46, 0.0  ;;  %v508_v62 = vmax.f32 %v252_v26, 0.0  ;;  %v1323_v50 = vld [vmem:[%s4952_s1 + $0xd8] sm:$0xff]  ;;  %v1306_v46 = vld [vmem:[%s4952_s1 + $0x50] sm:$0xff] }
 0x1ef   :  { %v2297_v1 = vrot.slane %v938_v29, %v3449_v23  ;;  %v2228_v20 = vrot.slane %v896_v57, %v3473_v49  ;;  %v1307_v29 = vld [vmem:[%s4952_s1 + $0x58] sm:$0xff]  ;;  %v1149_v32 = vsel %vm527_vm0, %v478_v16, -inf }
 0x1f0   :  { %v1290_v19 = vsel %vm527_vm0, %v525_v36, -inf  ;;  %v1239_v33 = vsel %vm527_vm0, %v508_v62, -inf  ;;  %v1319_v44 = vld [vmem:[%s4952_s1 + $0xb8] sm:$0xff] }
 0x1f1   :  { %v4602_v27 = vsel %vm1651_vm8, %v2297_v1, %v2293_v15  ;;  %v4606_v28 = vsel %vm4963_vm1, %v2228_v20, %v4515_v21  ;;  %1054 = vmax.xlane.f32.xlu1 %v1053_v52  ;;  %1288 = vmax.xlane.f32.xlu0 %v1287_v58  ;;  %v1310_v21 = vld [vmem:[%s4952_s1 + $0x70] sm:$0xff]  ;;  %v1242_v58 = vsel %vm527_vm0, %v509_v34, -inf  ;;  %v526_v1 = vmax.f32 %v270_v45, 0.0 }
 0x1f2   :  { %v1031_v7 = vpop.xlane.xlu1 %1030  ;;  %v989_v40 = vpop.xlane.xlu0 %988  ;;  %2999 = vmatpush3.msra.mxu0 %v1310_v21  ;;  %v1322_v20 = vld [vmem:[%s4952_s1 + $0xd0] sm:$0xff]  ;;  %v1304_v21 = vld [vmem:[%s4952_s1 + $0x40] sm:$0xff] }
 0x1f3   :  { %v2450_v15 = vrot.slane %v1031_v7, %v3422_v4  ;;  %v2381_v0 = vrot.slane %v989_v40, %v3446_v22  ;;  %3000 = vmatprep.subr.mxu0 %v1325_v24  ;;  %v1245_v7 = vsel %vm527_vm0, %v510_v14, -inf  ;;  %v1293_v40 = vsel %vm527_vm0, %v526_v1, -inf  ;;  %v1318_v24 = vld [vmem:[%s4952_s1 + $0xb0] sm:$0xff]  ;;  %vm4964_vm0 = vmmov %vm4963_vm1 }
 0x1f4   :  { %3001 = vmatpush3.msra.mxu0 %v1309_v25  ;;  %vm4965_vm2 = vmmov %vm4964_vm0  ;;  %vm2891_vm1 = vcmask 1043459  }
 0x1f5   :  { %v4632_v30 = vsel %vm1644_vm7, %v2450_v15, %v4549_v59  ;;  %v4636_v42 = vsel %vm1658_vm9, %v2381_v0, %v4530_v39  ;;  %1198 = vmax.xlane.f32.xlu1 %v1197_v56  ;;  %1147 = vmax.xlane.f32.xlu0 %v1146_v12  ;;  %v1320_v12 = vld [vmem:[%s4952_s1 + $0xc0] sm:$0xff]  ;;  %vm4967_vm4 = vmmov %vm4964_vm0 }
 0x1f6   :  { %v1124_v13 = vpop.xlane.xlu1 %1123  ;;  %v1082_v35 = vpop.xlane.xlu0 %1081  ;;  %3002 = vmatprep.subr.mxu0 %v1324_v31 }
 0x1f7   :  { %v2603_v59 = vrot.slane %v1124_v13, %v3433_v11  ;;  %v2534_v39 = vrot.slane %v1082_v35, %v3449_v23  ;;  %3003 = vmatpush3.msra.mxu0 %v1308_v6  ;;  %v1302_v13 = vld [vmem:[%s4952_s1 + $0x30] sm:$0xff] }
 0x1f8   :  { %3004 = vmatprep.subr.mxu0 %v1323_v50  ;;  %v1315_v50 = vld [vmem:[%s4952_s1 + $0x98] sm:$0xff] }
 0x1f9   :  { %v4659_v43 = vsel %vm1637_vm6, %v2603_v59, %v4566_v41  ;;  %v4663_v53 = vsel %vm1651_vm8, %v2534_v39, %v4545_v55  ;;  %1291 = vmax.xlane.f32.xlu1 %v1290_v19  ;;  %1240 = vmax.xlane.f32.xlu0 %v1239_v33  ;;  %v1317_v33 = vld [vmem:[%s4952_s1 + $0xa8] sm:$0xff] }
 0x1fa   :  { %v1217_v57 = vpop.xlane.xlu1 %1216  ;;  %v1175_v52 = vpop.xlane.xlu0 %1174  ;;  %3005 = vmatpush3.msra.mxu0 %v1307_v29 }
 0x1fb   :  { %v2756_v41 = vrot.slane %v1217_v57, %v3403_v51  ;;  %v2687_v55 = vrot.slane %v1175_v52, %v3422_v4  ;;  %v1321_v51 = vld [vmem:[%s4952_s1 + $0xc8] sm:$0xff]  ;;  %3006 = vmatprep.subr.mxu0 %v1322_v20 }
 0x1fc   :  { %3007 = vmatpush3.msra.mxu0 %v1306_v46  ;;  %v1312_v46 = vld [vmem:[%s4952_s1 + $0x80] sm:$0xff] }
 0x1fd   :  { %v4680_v26 = vsel %vm1630_vm5, %v2756_v41, %v4583_v10  ;;  %v2688_v3 = vsel %vm1644_vm7, %v2687_v55, %v4562_v9  ;;  %1243 = vmax.xlane.f32.xlu1 %v1242_v58  ;;  %1150 = vmax.xlane.f32.xlu0 %v1149_v32  ;;  %v1305_v9 = vld [vmem:[%s4952_s1 + $0x48] sm:$0xff]  ;;  %v1298_v32 = vld [vmem:[%s4952_s1 + $0x10] sm:$0xff]  ;;  %vm4968_vm5 = vmmov %vm4966_vm3 }
 0x1fe   :  { %v899_v2 = vpop.xlane.xlu1 %898  ;;  %v1268_v38 = vpop.xlane.xlu0 %1267  ;;  %3008 = vmatprep.subr.mxu0 %v1321_v51  ;;  %v1313_v41 = vld [vmem:[%s4952_s1 + $0x88] sm:$0xff] }
 0x1ff   :  { %v2233_v56 = vrot.slane %v899_v2, %v3470_v48  ;;  %v2840_v10 = vrot.slane %v1268_v38, %v3433_v11  ;;  %3009 = vmatpush3.msra.mxu0 %v1305_v9 }
 0x200   :  { %3010 = vmatprep.subr.mxu0 %v1320_v12 }
 0x201   :  { %v4699_v36 = vsel %vm1672_vm11, %v2233_v56, %v4606_v28  ;;  %v2841_v62 = vsel %vm1637_vm6, %v2840_v10, %v4579_v47  ;;  %1246 = vmax.xlane.f32.xlu1 %v1245_v7  ;;  %1294 = vmax.xlane.f32.xlu0 %v1293_v40  ;;  %v1303_v47 = vld [vmem:[%s4952_s1 + $0x38] sm:$0xff] }
 0x202   :  { %v992_v15 = vpop.xlane.xlu1 %991  ;;  %v941_v0 = vpop.xlane.xlu0 %940  ;;  %3011 = vmatpush3.msra.mxu0 %v1304_v21 }
 0x203   :  { %v2386_v37 = vrot.slane %v992_v15, %v3473_v49  ;;  %v2302_v28 = vrot.slane %v941_v0, %v3446_v22  ;;  %3012 = vmatprep.subr.mxu0 %v1319_v44 }
 0x204   :  { %3013 = vmatpush3.msra.mxu0 %v1303_v47 }
 0x205   :  { %v2387_v25 = vsel %vm4964_vm0, %v2386_v37, %v4636_v42  ;;  %v2303_v31 = vsel %vm1658_vm9, %v2302_v28, %v4602_v27  ;;  %3014 = vmatprep.subr.mxu0 %v1318_v24  ;;  %v1301_v27 = vld [vmem:[%s4952_s1 + $0x28] sm:$0xff]  ;;  %v1316_v42 = vld [vmem:[%s4952_s1 + $0xa0] sm:$0xff] }
 0x206   :  { %v1085_v35 = vpop.xlane.xlu1 %1084  ;;  %v1034_v19 = vpop.xlane.xlu0 %1033  ;;  %3015 = vmatpush3.msra.mxu0 %v1302_v13 }
 0x207   :  { %v2539_v34 = vrot.slane %v1085_v35, %v3446_v22  ;;  %v2455_v16 = vrot.slane %v1034_v19, %v3449_v23  ;;  %3016 = vmatprep.subr.mxu0 %v1317_v33 }
 0x208   :  { %3017 = vmatpush3.msra.mxu0 %v1301_v27 }
 0x209   :  { %v2540_v59 = vsel %vm1658_vm9, %v2539_v34, %v4663_v53  ;;  %v2456_v39 = vsel %vm1651_vm8, %v2455_v16, %v4632_v30  ;;  %3018 = vmatprep.subr.mxu0 %v1316_v42  ;;  %v1299_v30 = vld [vmem:[%s4952_s1 + $0x18] sm:$0xff]  ;;  %v1314_v53 = vld [vmem:[%s4952_s1 + $0x90] sm:$0xff] }
 0x20a   :  { %v1178_v45 = vpop.xlane.xlu1 %1177  ;;  %v1127_v6 = vpop.xlane.xlu0 %1126  ;;  %3019 = vmatpush3.msra.mxu0 %v1300_v63 }
 0x20b   :  { %v2692_v29 = vrot.slane %v1178_v45, %v3449_v23  ;;  %v2608_v57 = vrot.slane %v1127_v6, %v3422_v4  ;;  %3020 = vmatprep.subr.mxu0 %v1315_v50 }
 0x20c   :  { %3021 = vmatpush3.msra.mxu0 %v1299_v30 }
 0x20d   :  { %v2693_v52 = vsel %vm1651_vm8, %v2692_v29, %v2688_v3  ;;  %v2609_v58 = vsel %vm1644_vm7, %v2608_v57, %v4659_v43  ;;  %3022 = vmatprep.subr.mxu0 %v1314_v53  ;;  %v1297_v43 = vld [vmem:[%s4952_s1 + $0x8] sm:$0xff] }
 0x20e   :  { %v1271_v14 = vpop.xlane.xlu1 %1270  ;;  %v1220_v1 = vpop.xlane.xlu0 %1219  ;;  %3023 = vmatpush3.msra.mxu0 %v1298_v32 }
 0x20f   :  { %v2845_v55 = vrot.slane %v1271_v14, %v3422_v4  ;;  %v2761_v20 = vrot.slane %v1220_v1, %v3433_v11  ;;  %3024 = vmatprep.subr.mxu0 %v1313_v41  ;;  %v1296_v11 = vld [vmem:[%s4952_s1] sm:$0xff] }
 0x210   :  { %3025 = vmatpush3.msra.mxu0 %v1297_v43 }
 0x211   :  { %v2846_v3 = vsel %vm1644_vm7, %v2845_v55, %v2841_v62  ;;  %v2762_v51 = vsel %vm1637_vm6, %v2761_v20, %v4680_v26  ;;  %3026 = vmatprep.subr.mxu0 %v1312_v46  ;;  %vm4969_vm6 = vmmov %vm4964_vm0 }
 0x212   :  { %v944_v2 = vpop.xlane.xlu1 %943  ;;  %v902_v38 = vpop.xlane.xlu0 %901  ;;  %3027 = vmatpush3.msra.mxu0 %v1296_v11 }
 0x213   :  { %v2307_v7 = vrot.slane %v944_v2, %v3473_v49  ;;  %v2238_v40 = vrot.slane %v902_v38, %v3486_v61 }
 0x215   :  { %v2308_v56 = vsel %vm4965_vm2, %v2307_v7, %v2303_v31  ;;  %v2239_v10 = vsel %vm4966_vm3, %v2238_v40, %v4699_v36  ;;  %vm4974_vm2 = vmmov %vm4966_vm3 }
 0x216   :  { %v1037_v26 = vpop.xlane.xlu1 %1036  ;;  %v995_v9 = vpop.xlane.xlu0 %994  ;;  %vm4975_vm3 = vmmov %vm4974_vm2 }
 0x217   :  { %v2460_v12 = vrot.slane %v1037_v26, %v3446_v22  ;;  %v2391_v62 = vrot.slane %v995_v9, %v3470_v48 }
 0x219   :  { %v2461_v21 = vsel %vm1658_vm9, %v2460_v12, %v2456_v39  ;;  %v2392_v15 = vsel %vm1672_vm11, %v2391_v62, %v2387_v25 }
 0x21a   :  { %v1130_v0 = vpop.xlane.xlu1 %1129  ;;  %v1088_v44 = vpop.xlane.xlu0 %1087 }
 0x21b   :  { %v2613_v37 = vrot.slane %v1130_v0, %v3449_v23  ;;  %v2544_v28 = vrot.slane %v1088_v44, %v3473_v49 }
 0x21d   :  { %v2614_v47 = vsel %vm1651_vm8, %v2613_v37, %v2609_v58  ;;  %v2545_v36 = vsel %vm4967_vm4, %v2544_v28, %v2540_v59  ;;  %vm2897_vm4 = vcmask 1046534  }
 0x21e   :  { %v1223_v24 = vpop.xlane.xlu1 %1222  ;;  %v1181_v31 = vpop.xlane.xlu0 %1180 }
 0x21f   :  { %v2766_v13 = vrot.slane %v1223_v24, %v3422_v4  ;;  %v2697_v35 = vrot.slane %v1181_v31, %v3446_v22 }
 0x221   :  { %v2767_v19 = vsel %vm1644_vm7, %v2766_v13, %v2762_v51  ;;  %v2698_v25 = vsel %vm1658_vm9, %v2697_v35, %v2693_v52  ;;  %vm4970_vm7 = vmmov %vm4964_vm0 }
 0x222   :  { %v905_v33 = vpop.xlane.xlu1 %904  ;;  %v1274_v34 = vpop.xlane.xlu0 %1273 }
 0x223   :  { %v2243_v16 = vrot.slane %v905_v33, %v3483_v60  ;;  %v2850_v27 = vrot.slane %v1274_v34, %v3449_v23 }
 0x225   :  { %v2244_v42 = vsel %vm1686_vm13, %v2243_v16, %v2239_v10  ;;  %v2851_v59 = vsel %vm1651_vm8, %v2850_v27, %v2846_v3 }
 0x226   :  { %v998_v39 = vpop.xlane.xlu1 %997  ;;  %v947_v63 = vpop.xlane.xlu0 %946 }
 0x227   :  { %v2396_v4 = vrot.slane %v998_v39, %v3486_v61  ;;  %v2312_v45 = vrot.slane %v947_v63, %v3470_v48 }
 0x229   :  { %v2397_v6 = vsel %vm4968_vm5, %v2396_v4, %v2392_v15  ;;  %v2313_v50 = vsel %vm1672_vm11, %v2312_v45, %v2308_v56  ;;  %vm4976_vm5 = vmmov %vm4969_vm6 }
 0x22a   :  { %v1091_v29 = vpop.xlane.xlu1 %1090  ;;  %v1040_v57 = vpop.xlane.xlu0 %1039 }
 0x22b   :  { %v2549_v30 = vrot.slane %v1091_v29, %v3470_v48  ;;  %v2465_v53 = vrot.slane %v1040_v57, %v3473_v49 }
 0x22d   :  { %v2550_v52 = vsel %vm1672_vm11, %v2549_v30, %v2545_v36  ;;  %v2466_v58 = vsel %vm4969_vm6, %v2465_v53, %v2461_v21  ;;  %vm4977_vm6 = vmmov %vm4974_vm2 }
 0x22e   :  { %v1184_v32 = vpop.xlane.xlu1 %1183  ;;  %v1133_v14 = vpop.xlane.xlu0 %1132 }
 0x22f   :  { %v2702_v1 = vrot.slane %v1184_v32, %v3473_v49  ;;  %v2618_v41 = vrot.slane %v1133_v14, %v3446_v22 }
 0x231   :  { %v2703_v55 = vsel %vm4970_vm7, %v2702_v1, %v2698_v25  ;;  %v2619_v20 = vsel %vm1658_vm9, %v2618_v41, %v2614_v47  ;;  %vm4978_vm7 = vmmov %vm4976_vm5 }
 0x232   :  { %v1277_v43 = vpop.xlane.xlu1 %1276  ;;  %v1226_v46 = vpop.xlane.xlu0 %1225 }
 0x233   :  { %v2855_v3 = vrot.slane %v1277_v43, %v3446_v22  ;;  %v2771_v51 = vrot.slane %v1226_v46, %v3449_v23 }
 0x235   :  { %v4812_v11 = vsel %vm1658_vm9, %v2855_v3, %v2851_v59  ;;  %v2772_v2 = vsel %vm1651_vm8, %v2771_v51, %v2767_v19  ;;  %vm4972_vm8 = vmmov %vm4964_vm0  ;;  %vm2895_vm0 = vcmask 1045509  }
 0x236   :  { %v950_v38 = vpop.xlane.xlu1 %949  ;;  %v908_v7 = vpop.xlane.xlu0 %907 }
 0x237   :  { %v2317_v40 = vrot.slane %v950_v38, %v3486_v61  ;;  %v2248_v56 = vrot.slane %v908_v7, %v3511_v18 }
 0x239   :  { %v2318_v10 = vsel %vm4971_vm10, %v2317_v40, %v2313_v50  ;;  %v2249_v26 = vsel %vm1693_vm14, %v2248_v56, %v2244_v42  ;;  %vm4979_vm10 = vmmov %vm4974_vm2 }
 0x23a   :  { %v1043_v9 = vpop.xlane.xlu1 %1042  ;;  %v1001_v12 = vpop.xlane.xlu0 %1000 }
 0x23b   :  { %v2470_v62 = vrot.slane %v1043_v9, %v3470_v48  ;;  %v2401_v23 = vrot.slane %v1001_v12, %v3483_v60 }
 0x23d   :  { %v4822_v21 = vsel %vm1672_vm11, %v2470_v62, %v2466_v58  ;;  %v2402_v15 = vsel %vm1686_vm13, %v2401_v23, %v2397_v6 }
 0x23e   :  { %v1136_v0 = vpop.xlane.xlu1 %1135  ;;  %v1094_v44 = vpop.xlane.xlu0 %1093 }
 0x23f   :  { %v2623_v37 = vrot.slane %v1136_v0, %v3473_v49  ;;  %v2554_v28 = vrot.slane %v1094_v44, %v3486_v61 }
 0x241   :  { %v4828_v47 = vsel %vm4972_vm8, %v2623_v37, %v2619_v20  ;;  %v2555_v36 = vsel %vm4973_vm12, %v2554_v28, %v2550_v52  ;;  %vm4980_vm8 = vmmov %vm4974_vm2  ;;  %vm2899_vm12 = vcmask 1047559  }
 0x242   :  { %v1229_v24 = vpop.xlane.xlu1 %1228  ;;  %v1187_v31 = vpop.xlane.xlu0 %1186 }
 0x243   :  { %v2776_v13 = vrot.slane %v1229_v24, %v3446_v22  ;;  %v2707_v35 = vrot.slane %v1187_v31, %v3470_v48 }
 0x245   :  { %v4834_v19 = vsel %vm1658_vm9, %v2776_v13, %v2772_v2  ;;  %v4837_v25 = vsel %vm1672_vm11, %v2707_v35, %v2703_v55  ;;  %vm2893_vm9 = vcmask 1044484  }
 0x246   :  { %v860_v33 = vpop.xlane.xlu1 %859  ;;  %v4839_v34 = vpop.xlane.xlu0 %1279 }
 0x247   :  { %v2169_v29 = vrot.slane %v860_v33, %v3511_v18 }
 0x249   :  { %v2170_v52 = vsel %vm1693_vm14, %v2169_v29, %v4110_v54 }
 0x24a   :  { %v953_v16 = vpop.xlane.xlu1 %952  ;;  %v911_v27 = vpop.xlane.xlu0 %910 }
 0x24b   :  { %v2253_v42 = vrot.slane %v911_v27, %v3508_v17 }
 0x24d   :  { %v2254_v59 = vsel %vm1700_vm15, %v2253_v42, %v2249_v26 }
 0x24e   :  { %v2903_v22 = vsel %vm2891_vm1, %v2254_v59, %v4033_v8  ;;  %v1046_v39 = vpop.xlane.xlu1 %1045  ;;  %v1004_v63 = vpop.xlane.xlu0 %1003 }
 0x24f   :  { %v2406_v8 = vrot.slane %v1004_v63, %v3511_v18  ;;  %v2475_v13 = vrot.slane %v1046_v39, %v3486_v61 }
 0x251   :  { %v2407_v55 = vsel %vm1693_vm14, %v2406_v8, %v2402_v15 }
 0x252   :  { %v4845_v4 = vpop.xlane.xlu1 %1138  ;;  %v1097_v45 = vpop.xlane.xlu0 %1096 }
 0x253   :  { %v2559_v9 = vrot.slane %v1097_v45, %v3483_v60 }
 0x255   :  { %v2560_v28 = vsel %vm1686_vm13, %v2559_v9, %v2555_v36  ;;  %v2476_v36 = vsel %vm4974_vm2, %v2475_v13, %v4822_v21 }
 0x256   :  { %v4847_v6 = vpop.xlane.xlu1 %1231  ;;  %v1190_v50 = vpop.xlane.xlu0 %1189 }
 0x257   :  { %v2712_v59 = vrot.slane %v1190_v50, %v3486_v61 }
 0x259   :  { %v2713_v8 = vsel %vm4975_vm3, %v2712_v59, %v4837_v25  ;;  %v2995_v59 = vld [vmem:[%s4953_s2] ss:$0 sm:$0xff] }
 0x25a   :  { %v863_v57 = vpop.xlane.xlu1 %862  ;;  %v4850_v30 = vpop.xlane.xlu0 %1282 }
 0x25b   :  { %v2174_v53 = vrot.slane %v863_v57, %v3508_v17 }
 0x25d   :  { %v2175_v58 = vsel %vm1700_vm15, %v2174_v53, %v2170_v52 }
 0x25e   :  { %v2892_v32 = vsel %vm2891_vm1, %v2175_v58, %v3934_v5  ;;  %v1007_v14 = vpop.xlane.xlu1 %1006  ;;  %v956_v1 = vpop.xlane.xlu0 %955  ;;  %v2322_v5 = vrot.slane %v953_v16, %v3483_v60 }
 0x25f   :  { %v2411_v41 = vrot.slane %v1007_v14, %v3508_v17  ;;  %v2327_v7 = vrot.slane %v956_v1, %v3511_v18 }
 0x260   :  { %v2323_v26 = vsel %vm1686_vm13, %v2322_v5, %v2318_v10  ;;  %v2781_v5 = vrot.slane %v4847_v6, %v3473_v49 }
 0x261   :  { %v2412_v20 = vsel %vm1700_vm15, %v2411_v41, %v2407_v55  ;;  %v2328_v62 = vsel %vm1693_vm14, %v2327_v7, %v2323_v26  ;;  %v2628_v41 = vrot.slane %v4845_v4, %v3470_v48 }
 0x262   :  { %v1100_v43 = vpop.xlane.xlu1 %1099  ;;  %v1049_v46 = vpop.xlane.xlu0 %1048  ;;  %v2904_v54 = vsel %vm2893_vm9, %v2412_v20, %v2903_v22  ;;  %v2860_v20 = vrot.slane %v4839_v34, %v3473_v49 }
 0x263   :  { %v2564_v23 = vrot.slane %v1100_v43, %v3511_v18  ;;  %v2480_v27 = vrot.slane %v1049_v46, %v3483_v60  ;;  %v2629_v4 = vsel %vm1672_vm11, %v2628_v41, %v4828_v47 }
 0x265   :  { %v2565_v10 = vsel %vm1693_vm14, %v2564_v23, %v2560_v28  ;;  %v2481_v45 = vsel %vm1686_vm13, %v2480_v27, %v2476_v36 }
 0x266   :  { %v1193_v3 = vpop.xlane.xlu1 %1192  ;;  %v1142_v51 = vpop.xlane.xlu0 %1141 }
 0x267   :  { %v2717_v29 = vrot.slane %v1193_v3, %v3483_v60  ;;  %v2633_v25 = vrot.slane %v1142_v51, %v3486_v61  ;;  %v2861_v51 = vsel %vm4976_vm5, %v2860_v20, %v4812_v11  ;;  %v2782_v11 = vsel %vm4978_vm7, %v2781_v5, %v4834_v19 }
 0x26a   :  { %v4863_v2 = vpop.xlane.xlu1 %1285  ;;  %v4865_v38 = vpop.xlane.xlu0 %1234 }
 0x26b   :  { %v2786_v34 = vrot.slane %v4865_v38, %v3470_v48  ;;  %v2870_v26 = vrot.slane %v4863_v2, %v3486_v61 }
 0x26d   :  { %v2787_v23 = vsel %vm1672_vm11, %v2786_v34, %v2782_v11 }
 0x26e   :  { %v1052_v40 = vpop.xlane.xlu1 %1051  ;;  %v959_v56 = vpop.xlane.xlu0 %958 }
 0x26f   :  { %v2332_v12 = vrot.slane %v959_v56, %v3508_v17  ;;  %v2485_v42 = vrot.slane %v1052_v40, %v3511_v18  ;;  %v2865_v40 = vrot.slane %v4850_v30, %v3470_v48  ;;  %v2634_v56 = vsel %vm4977_vm6, %v2633_v25, %v2629_v4 }
 0x271   :  { %v2333_v15 = vsel %vm1700_vm15, %v2332_v12, %v2328_v62  ;;  %v2486_v57 = vsel %vm1693_vm14, %v2485_v42, %v2481_v45 }
 0x272   :  { %v2894_v0 = vsel %vm2893_vm9, %v2333_v15, %v2892_v32  ;;  %v1145_v44 = vpop.xlane.xlu1 %1144  ;;  %v1103_v37 = vpop.xlane.xlu0 %1102  ;;  %v2718_v32 = vsel %vm1686_vm13, %v2717_v29, %v2713_v8 }
 0x273   :  { %v2569_v24 = vrot.slane %v1103_v37, %v3508_v17  ;;  %v2638_v3 = vrot.slane %v1145_v44, %v3483_v60 }
 0x275   :  { %v2570_v31 = vsel %vm1700_vm15, %v2569_v24, %v2565_v10  ;;  %v2639_v47 = vsel %vm1686_vm13, %v2638_v3, %v2634_v56 }
 0x276   :  { %v1238_v35 = vpop.xlane.xlu1 %1237  ;;  %v1196_v33 = vpop.xlane.xlu0 %1195  ;;  %v2905_v16 = vsel %vm2895_vm0, %v2570_v31, %v2904_v54 }
 0x277   :  { %v2722_v53 = vrot.slane %v1196_v33, %v3511_v18  ;;  %v2791_v49 = vrot.slane %v1238_v35, %v3486_v61  ;;  %v2866_v61 = vsel %vm1672_vm11, %v2865_v40, %v2861_v51 }
 0x279   :  { %v2723_v1 = vsel %vm1693_vm14, %v2722_v53, %v2718_v32 }
 0x27a   :  { %v1055_v22 = vpop.xlane.xlu1 %1054  ;;  %v1289_v63 = vpop.xlane.xlu0 %1288 }
 0x27b   :  { %v2490_v39 = vrot.slane %v1055_v22, %v3508_v17  ;;  %v2875_v12 = vrot.slane %v1289_v63, %v3483_v60 }
 0x27d   :  { %v2491_v52 = vsel %vm1700_vm15, %v2490_v39, %v2486_v57 }
 0x27e   :  { %v1199_v21 = vpop.xlane.xlu1 %1198  ;;  %v1148_v58 = vpop.xlane.xlu0 %1147  ;;  %v2896_v50 = vsel %vm2895_vm0, %v2491_v52, %v2894_v0  ;;  %v2871_v0 = vsel %vm4979_vm10, %v2870_v26, %v2866_v61 }
 0x27f   :  { %v2727_v14 = vrot.slane %v1199_v21, %v3508_v17  ;;  %v2643_v7 = vrot.slane %v1148_v58, %v3511_v18  ;;  %v2876_v28 = vsel %vm1686_vm13, %v2875_v12, %v2871_v0 }
 0x281   :  { %v2728_v55 = vsel %vm1700_vm15, %v2727_v14, %v2723_v1  ;;  %v2644_v38 = vsel %vm1693_vm14, %v2643_v7, %v2639_v47 }
 0x282   :  { %v1292_v43 = vpop.xlane.xlu1 %1291  ;;  %v1241_v46 = vpop.xlane.xlu0 %1240  ;;  %v2906_v54 = vsel %vm2897_vm4, %v2728_v55, %v2905_v16 }
 0x283   :  { %v2796_v30 = vrot.slane %v1241_v46, %v3483_v60  ;;  %v2880_v62 = vrot.slane %v1292_v43, %v3511_v18  ;;  %v2792_v60 = vsel %vm4980_vm8, %v2791_v49, %v2787_v23 }
 0x285   :  { %v2797_v24 = vsel %vm1686_vm13, %v2796_v30, %v2792_v60  ;;  %v2881_v13 = vsel %vm1693_vm14, %v2880_v62, %v2876_v28 }
 0x286   :  { %v1244_v6 = vpop.xlane.xlu1 %1243  ;;  %v1151_v9 = vpop.xlane.xlu0 %1150 }
 0x287   :  { %v2648_v48 = vrot.slane %v1151_v9, %v3508_v17  ;;  %v2801_v2 = vrot.slane %v1244_v6, %v3511_v18 }
 0x289   :  { %v2649_v15 = vsel %vm1700_vm15, %v2648_v48, %v2644_v38  ;;  %v2802_v31 = vsel %vm1693_vm14, %v2801_v2, %v2797_v24 }
 0x28a   :  { %v1247_v44 = vpop.xlane.xlu1 %1246  ;;  %v1295_v37 = vpop.xlane.xlu0 %1294  ;;  %v2898_v19 = vsel %vm2897_vm4, %v2649_v15, %v2896_v50 }
 0x28b   :  { %v2806_v18 = vrot.slane %v1247_v44, %v3508_v17  ;;  %v2885_v10 = vrot.slane %v1295_v37, %v3508_v17 }
 0x28d   :  { %v2886_v35 = vsel %vm1700_vm15, %v2885_v10, %v2881_v13  ;;  %v2807_v33 = vsel %vm1700_vm15, %v2806_v18, %v2802_v31 }
 0x28e   :  { %v2907_v16 = vsel %vm2899_vm12, %v2886_v35, %v2906_v54  ;;  %v2900_v27 = vsel %vm2899_vm12, %v2807_v33, %v2898_v19 }
 0x28f   :  { %2974 = vmatprep.mubr.f32.mxu0 %v2907_v16 }
 0x290   :  { %2975 = vmatmul.mubr.f32.vlgmr.msra.gmra.mxu0 %v2900_v27 }
 0x350   :  { %v3028_v42 = vpop.f32.mrf.mxu0 }
 0x352   :  { %v3029_v36 = vpop.f32.mrf.mxu0 }
 0x353   :  { %v3030_v17 = vadd.f32 %v3029_v36, %v3028_v42 }
 0x355   :  { %v2977_v22 = vadd.f32 %v3030_v17, %v2995_v59 }
 0x357   :  { %2980 = vst [vmem:[#allocation2] sm:$0xff] %v2977_v22 }
 0x358   :  { %3043 = shalt.err (!%p3040_p4)
}
 0x359   :  { %2990 = dma.vmem_to_hbm [thread:$0]  %s2988_s21, 128, %s4954_s3, [#allocation3]  }
 0x35a   :  { %3052 = dma.done.wait [#allocation3], 128  }
 0x35b   :  { %3053 = vsyncadd [#allocation3], 4294967168 }
 0x35c   :  { %2994 = vsyncpa [#allocation3], 1 }

</bundles_post_ra>
